<compile_context>
chip_gen: v7x
topology: tpu7x:2x2x1
jax: 0.10.0
libtpu: 0.0.40
codegen_flags: <defaults>
</compile_context>

<pallas_src>
import functools

import jax
import jax.numpy as jnp
from jax.experimental import pallas as pl
from jax.experimental.pallas import tpu as pltpu


# --------------------------- in-kernel building blocks -----------------------

def _conv1d_same(x, w_ref, b_ref, pos, seq_len, act):
    """'Same' Conv1d along the flattened, example-major M axis.

    x:      (Cin, M)  activation value (channels-first, lane-dense).
    w_ref:  (k, Cout, Cin) VMEM ref (pre-transposed Conv1d weight).
    b_ref:  (Cout, 1) VMEM ref.
    pos:    (1, M) int32 position of every column inside its example.
    """
    k, cout, cin = w_ref.shape
    m = x.shape[1]
    pad = (k - 1) // 2
    acc = None
    for t in range(k):
        d = t - pad                              # this tap reads x[:, m + d]
        if d == 0:
            xs = x
        else:
            xs = pltpu.roll(x, shift=(-d) % m, axis=1)
            valid = jnp.logical_and(pos + d >= 0, pos + d < seq_len)
            xs = jnp.where(valid, xs, 0.0)       # zero padding at example edges
        w_t = w_ref[t]                           # (Cout, Cin)
        if cin <= 4:
            # Tiny contraction (Cin = 1 or 3): VPU broadcast-FMA, skip the MXU.
            part = w_t[:, 0:1] * xs[0:1, :]
            for ci in range(1, cin):
                part = part + w_t[:, ci:ci + 1] * xs[ci:ci + 1, :]
        else:
            part = jnp.dot(w_t, xs, preferred_element_type=jnp.float32)
        acc = part if acc is None else acc + part
    y = acc + b_ref[...]                         # (Cout, M) + (Cout, 1)
    if act == "elu":
        # exp(min(y, 0)) avoids overflow of the discarded positive branch.
        y = jnp.where(y > 0.0, y, jnp.exp(jnp.minimum(y, 0.0)) - 1.0)
    elif act == "sigmoid":
        y = 1.0 / (1.0 + jnp.exp(-y))            # exact; output stays in [0, 1]
    return y


def _encoder_kernel(msg_ref, pos_ref, w1, b1, w2, b2, w3, b3, code_ref, *,
                    seq_len):
    pos = pos_ref[...]
    x = 1.0 - 2.0 * msg_ref[...]                 # torch.pow(-1, message) (BPSK)
    h = _conv1d_same(x, w1, b1, pos, seq_len, "elu")
    h = _conv1d_same(h, w2, b2, pos, seq_len, "elu")
    code_ref[...] = _conv1d_same(h, w3, b3, pos, seq_len, None)


def _decoder_kernel(stats_ref, code_ref, noise_ref, pos_ref,
                    w1, b1, w2, b2, w3, b3, out_ref, *, seq_len):
    pos = pos_ref[...]
    mean, inv_std = stats_ref[0], stats_ref[1]
    # Channel folded into the decoder prologue: power-normalize + AWGN add.
    rx = (code_ref[...] - mean) * inv_std + noise_ref[...]
    h = _conv1d_same(rx, w1, b1, pos, seq_len, "elu")
    h = _conv1d_same(h, w2, b2, pos, seq_len, "elu")
    out_ref[...] = _conv1d_same(h, w3, b3, pos, seq_len, "sigmoid")


# --------------------------- pallas_call wrappers -----------------------------

_COMPILER_PARAMS = pltpu.CompilerParams(
    dimension_semantics=("parallel",),           # megacore / v7x dual-TC
    vmem_limit_bytes=32 * 1024 * 1024,
)


def _act_spec(c, m_tile):
    # index_map takes (grid_i, *scalar_prefetch_refs)
    return pl.BlockSpec((c, m_tile), lambda i, *_: (0, i))


def _resident_spec(arr):
    n = arr.ndim
    return pl.BlockSpec(arr.shape, lambda i, *_: (0,) * n)


def encode(enc_params, msg_flat, pos_ids, *, seq_len, batch_tile, code_ch):
    _, m = msg_flat.shape
    m_tile = batch_tile * seq_len
    (w1, b1), (w2, b2), (w3, b3) = enc_params
    grid_spec = pltpu.PrefetchScalarGridSpec(
        num_scalar_prefetch=0,
        grid=(m // m_tile,),
        in_specs=[_act_spec(1, m_tile), _act_spec(1, m_tile),
                  _resident_spec(w1), _resident_spec(b1),
                  _resident_spec(w2), _resident_spec(b2),
                  _resident_spec(w3), _resident_spec(b3)],
        out_specs=_act_spec(code_ch, m_tile),
    )
    return pl.pallas_call(
        functools.partial(_encoder_kernel, seq_len=seq_len),
        out_shape=jax.ShapeDtypeStruct((code_ch, m), jnp.float32),
        grid_spec=grid_spec,
        compiler_params=_COMPILER_PARAMS,
    )(msg_flat, pos_ids, w1, b1, w2, b2, w3, b3)


def decode(dec_params, code, noise, pos_ids, stats, *, seq_len, batch_tile):
    code_ch, m = code.shape
    m_tile = batch_tile * seq_len
    (w1, b1), (w2, b2), (w3, b3) = dec_params
    grid_spec = pltpu.PrefetchScalarGridSpec(
        num_scalar_prefetch=1,                   # stats -> SMEM
        grid=(m // m_tile,),
        in_specs=[_act_spec(code_ch, m_tile), _act_spec(code_ch, m_tile),
                  _act_spec(1, m_tile),
                  _resident_spec(w1), _resident_spec(b1),
                  _resident_spec(w2), _resident_spec(b2),
                  _resident_spec(w3), _resident_spec(b3)],
        out_specs=_act_spec(1, m_tile),
    )
    return pl.pallas_call(
        functools.partial(_decoder_kernel, seq_len=seq_len),
        out_shape=jax.ShapeDtypeStruct((1, m), jnp.float32),
        grid_spec=grid_spec,
        compiler_params=_COMPILER_PARAMS,
    )(stats, code, noise, pos_ids, w1, b1, w2, b2, w3, b3)


# --------------------------- model --------------------------------------------

def init_params(key, hidden=32, code_ch=3, k=5):
    """Weights are created once in the pre-transposed (k, Cout, Cin) layout."""
    ks = jax.random.split(key, 6)

    def w(kk, ksize, cout, cin):
        fan_in = ksize * cin
        return (jax.random.normal(kk, (ksize, cout, cin), jnp.float32)
                / jnp.sqrt(float(fan_in)))

    def b(cout):
        return jnp.zeros((cout, 1), jnp.float32)

    return {
        "enc": [(w(ks[0], k, hidden, 1), b(hidden)),
                (w(ks[1], k, hidden, hidden), b(hidden)),
                (w(ks[2], 1, code_ch, hidden), b(code_ch))],
        "dec": [(w(ks[3], k, hidden, code_ch), b(hidden)),
                (w(ks[4], k, hidden, hidden), b(hidden)),
                (w(ks[5], 1, 1, hidden), b(1))],
    }


def cvt_cvt_ae_forward(params, message, noise, *, batch_tile):
    """message: (B, 1, L) binary bits (NCL, PyTorch layout).
    noise: (code_ch, B*L) AWGN in the kernel's channels-first layout."""
    B, _, L = message.shape
    M = B * L
    m_tile = batch_tile * L
    assert B % batch_tile == 0
    assert m_tile % 128 == 0 or m_tile == M, "tile must be lane aligned"

    code_ch = params["enc"][-1][0].shape[1]

    msg_flat = message.reshape(1, M).astype(jnp.float32)      # (1, B*L)
    pos_ids = jnp.tile(jnp.arange(L, dtype=jnp.int32), B).reshape(1, M)

    # Fused encoder (BPSK folded in): (1, M) -> codeword (code_ch, M).
    code = encode(params["enc"], msg_flat, pos_ids,
                  seq_len=L, batch_tile=batch_tile, code_ch=code_ch)

    # Channel statistics: one tiny single-pass reduction in plain JAX.
    # TODO(synk): reference channel may normalize per example; whole-tensor
    # statistics are kept to match the previous implementation's semantics.
    mu = jnp.mean(code)
    var = jnp.mean(code * code) - mu * mu
    inv_std = jax.lax.rsqrt(var + 1e-6)
    stats = jnp.stack([mu, inv_std]).astype(jnp.float32)      # (2,) -> SMEM

    # Fused decoder (channel normalize + AWGN add folded in): -> (1, M).
    probs = decode(params["dec"], code, noise, pos_ids, stats,
                   seq_len=L, batch_tile=batch_tile)

    output = probs.reshape(B, L)[:, None, :]                  # NCL (B, 1, L)
    return output, L


if __name__ == "__main__":
    key = jax.random.PRNGKey(0)
    kp, km, kn = jax.random.split(key, 3)

    B, L, HIDDEN, CODE_CH, KSZ = 8, 32, 32, 3, 5
    BATCH_TILE = 4           # 4 whole examples per tile -> 128-lane tiles, grid=(2,)

    params = init_params(kp, hidden=HIDDEN, code_ch=CODE_CH, k=KSZ)
    message = jax.random.bernoulli(km, 0.5, (B, 1, L)).astype(jnp.float32)
    noise = 0.1 * jax.random.normal(kn, (CODE_CH, B * L), jnp.float32)

    fwd = jax.jit(functools.partial(cvt_cvt_ae_forward, batch_tile=BATCH_TILE))
    out, src_len = fwd(params, message, noise)
    jax.block_until_ready(out)

    assert out.shape == (B, 1, L)
    assert int(src_len) == L
    assert bool(jnp.all(jnp.isfinite(out)))
    assert bool(jnp.all((out >= 0.0) & (out <= 1.0)))   # sigmoid output range
    print("KERNEL_OK")
</pallas_src>

<mosaic_0001>
module attributes {stable_mosaic.version = 11 : i64} {
  func.func @_encoder_kernel(%arg0: i32, %arg1: memref<1x128xf32, #tpu.memory_space<vmem>>, %arg2: memref<1x128xi32, #tpu.memory_space<vmem>>, %arg3: memref<5x32x1xf32, #tpu.memory_space<vmem>>, %arg4: memref<32x1xf32, #tpu.memory_space<vmem>>, %arg5: memref<5x32x32xf32, #tpu.memory_space<vmem>>, %arg6: memref<32x1xf32, #tpu.memory_space<vmem>>, %arg7: memref<1x3x32xf32, #tpu.memory_space<vmem>>, %arg8: memref<3x1xf32, #tpu.memory_space<vmem>>, %arg9: memref<3x128xf32, #tpu.memory_space<vmem>>) attributes {dimension_semantics = [#tpu.dimension_semantics<parallel>], iteration_bounds = array<i64: 2>, scalar_prefetch = 0 : i64, scratch_operands = 0 : i64, tpu.core_type = #tpu.core_type<tc>, window_params = [{transform_indices = @transform_0, window_bounds = array<i64: 1, 128>}, {transform_indices = @transform_1, window_bounds = array<i64: 1, 128>}, {pipeline_mode = #tpu.pipeline_mode<synchronous>, transform_indices = @transform_2, window_bounds = array<i64: 5, 32, 1>}, {pipeline_mode = #tpu.pipeline_mode<synchronous>, transform_indices = @transform_3, window_bounds = array<i64: 32, 1>}, {pipeline_mode = #tpu.pipeline_mode<synchronous>, transform_indices = @transform_4, window_bounds = array<i64: 5, 32, 32>}, {pipeline_mode = #tpu.pipeline_mode<synchronous>, transform_indices = @transform_5, window_bounds = array<i64: 32, 1>}, {pipeline_mode = #tpu.pipeline_mode<synchronous>, transform_indices = @transform_6, window_bounds = array<i64: 1, 3, 32>}, {pipeline_mode = #tpu.pipeline_mode<synchronous>, transform_indices = @transform_7, window_bounds = array<i64: 3, 1>}, {transform_indices = @transform_8, window_bounds = array<i64: 3, 128>}]} {
    %c0 = arith.constant 0 : index
    %c0_0 = arith.constant 0 : index
    %0 = vector.load %arg2[%c0, %c0_0] : memref<1x128xi32, #tpu.memory_space<vmem>>, vector<1x128xi32>
    %c0_1 = arith.constant 0 : index
    %c0_2 = arith.constant 0 : index
    %1 = vector.load %arg1[%c0_1, %c0_2] : memref<1x128xf32, #tpu.memory_space<vmem>>, vector<1x128xf32>
    %cst = arith.constant 2.000000e+00 : f32
    %2 = vector.broadcast %cst : f32 to vector<1x128xf32>
    %3 = arith.mulf %2, %1 : vector<1x128xf32>
    %cst_3 = arith.constant 1.000000e+00 : f32
    %4 = vector.broadcast %cst_3 : f32 to vector<1x128xf32>
    %5 = arith.subf %4, %3 : vector<1x128xf32>
    %c2_i32 = arith.constant 2 : i32
    %6 = tpu.dynamic_rotate %5 by %c2_i32 dim 1 : vector<1x128xf32>, i32 -> vector<1x128xf32>
    %c-2_i32 = arith.constant -2 : i32
    %7 = vector.broadcast %c-2_i32 : i32 to vector<1x128xi32>
    %8 = arith.addi %0, %7 : vector<1x128xi32>
    %c0_i32 = arith.constant 0 : i32
    %9 = vector.broadcast %c0_i32 : i32 to vector<1x128xi32>
    %10 = arith.cmpi sge, %8, %9 : vector<1x128xi32>
    %c-2_i32_4 = arith.constant -2 : i32
    %11 = vector.broadcast %c-2_i32_4 : i32 to vector<1x128xi32>
    %12 = arith.addi %0, %11 : vector<1x128xi32>
    %c32_i32 = arith.constant 32 : i32
    %13 = vector.broadcast %c32_i32 : i32 to vector<1x128xi32>
    %14 = arith.cmpi slt, %12, %13 : vector<1x128xi32>
    %15 = arith.andi %10, %14 : vector<1x128xi1>
    %cst_5 = arith.constant 0.000000e+00 : f32
    %16 = vector.broadcast %cst_5 : f32 to vector<1x128xf32>
    %17 = arith.select %15, %6, %16 : vector<1x128xi1>, vector<1x128xf32>
    %c0_6 = arith.constant 0 : index
    %c0_7 = arith.constant 0 : index
    %c0_8 = arith.constant 0 : index
    %18 = vector.load %arg3[%c0_6, %c0_7, %c0_8] : memref<5x32x1xf32, #tpu.memory_space<vmem>>, vector<1x32x1xf32>
    %19 = vector.shape_cast %18 : vector<1x32x1xf32> to vector<32x1xf32>
    %20 = vector.broadcast %19 : vector<32x1xf32> to vector<32x128xf32>
    %21 = vector.broadcast %17 : vector<1x128xf32> to vector<32x128xf32>
    %22 = arith.mulf %20, %21 : vector<32x128xf32>
    %c1_i32 = arith.constant 1 : i32
    %23 = tpu.dynamic_rotate %5 by %c1_i32 dim 1 : vector<1x128xf32>, i32 -> vector<1x128xf32>
    %c-1_i32 = arith.constant -1 : i32
    %24 = vector.broadcast %c-1_i32 : i32 to vector<1x128xi32>
    %25 = arith.addi %0, %24 : vector<1x128xi32>
    %c0_i32_9 = arith.constant 0 : i32
    %26 = vector.broadcast %c0_i32_9 : i32 to vector<1x128xi32>
    %27 = arith.cmpi sge, %25, %26 : vector<1x128xi32>
    %c-1_i32_10 = arith.constant -1 : i32
    %28 = vector.broadcast %c-1_i32_10 : i32 to vector<1x128xi32>
    %29 = arith.addi %0, %28 : vector<1x128xi32>
    %c32_i32_11 = arith.constant 32 : i32
    %30 = vector.broadcast %c32_i32_11 : i32 to vector<1x128xi32>
    %31 = arith.cmpi slt, %29, %30 : vector<1x128xi32>
    %32 = arith.andi %27, %31 : vector<1x128xi1>
    %cst_12 = arith.constant 0.000000e+00 : f32
    %33 = vector.broadcast %cst_12 : f32 to vector<1x128xf32>
    %34 = arith.select %32, %23, %33 : vector<1x128xi1>, vector<1x128xf32>
    %c1 = arith.constant 1 : index
    %c0_13 = arith.constant 0 : index
    %c0_14 = arith.constant 0 : index
    %35 = vector.load %arg3[%c1, %c0_13, %c0_14] : memref<5x32x1xf32, #tpu.memory_space<vmem>>, vector<1x32x1xf32>
    %36 = vector.shape_cast %35 : vector<1x32x1xf32> to vector<32x1xf32>
    %37 = vector.broadcast %36 : vector<32x1xf32> to vector<32x128xf32>
    %38 = vector.broadcast %34 : vector<1x128xf32> to vector<32x128xf32>
    %39 = arith.mulf %37, %38 : vector<32x128xf32>
    %40 = arith.addf %22, %39 : vector<32x128xf32>
    %c2 = arith.constant 2 : index
    %c0_15 = arith.constant 0 : index
    %c0_16 = arith.constant 0 : index
    %41 = vector.load %arg3[%c2, %c0_15, %c0_16] : memref<5x32x1xf32, #tpu.memory_space<vmem>>, vector<1x32x1xf32>
    %42 = vector.shape_cast %41 : vector<1x32x1xf32> to vector<32x1xf32>
    %43 = vector.broadcast %42 : vector<32x1xf32> to vector<32x128xf32>
    %44 = vector.broadcast %5 : vector<1x128xf32> to vector<32x128xf32>
    %45 = arith.mulf %43, %44 : vector<32x128xf32>
    %46 = arith.addf %40, %45 : vector<32x128xf32>
    %c127_i32 = arith.constant 127 : i32
    %47 = tpu.dynamic_rotate %5 by %c127_i32 dim 1 : vector<1x128xf32>, i32 -> vector<1x128xf32>
    %c1_i32_17 = arith.constant 1 : i32
    %48 = vector.broadcast %c1_i32_17 : i32 to vector<1x128xi32>
    %49 = arith.addi %0, %48 : vector<1x128xi32>
    %c0_i32_18 = arith.constant 0 : i32
    %50 = vector.broadcast %c0_i32_18 : i32 to vector<1x128xi32>
    %51 = arith.cmpi sge, %49, %50 : vector<1x128xi32>
    %c1_i32_19 = arith.constant 1 : i32
    %52 = vector.broadcast %c1_i32_19 : i32 to vector<1x128xi32>
    %53 = arith.addi %0, %52 : vector<1x128xi32>
    %c32_i32_20 = arith.constant 32 : i32
    %54 = vector.broadcast %c32_i32_20 : i32 to vector<1x128xi32>
    %55 = arith.cmpi slt, %53, %54 : vector<1x128xi32>
    %56 = arith.andi %51, %55 : vector<1x128xi1>
    %cst_21 = arith.constant 0.000000e+00 : f32
    %57 = vector.broadcast %cst_21 : f32 to vector<1x128xf32>
    %58 = arith.select %56, %47, %57 : vector<1x128xi1>, vector<1x128xf32>
    %c3 = arith.constant 3 : index
    %c0_22 = arith.constant 0 : index
    %c0_23 = arith.constant 0 : index
    %59 = vector.load %arg3[%c3, %c0_22, %c0_23] : memref<5x32x1xf32, #tpu.memory_space<vmem>>, vector<1x32x1xf32>
    %60 = vector.shape_cast %59 : vector<1x32x1xf32> to vector<32x1xf32>
    %61 = vector.broadcast %60 : vector<32x1xf32> to vector<32x128xf32>
    %62 = vector.broadcast %58 : vector<1x128xf32> to vector<32x128xf32>
    %63 = arith.mulf %61, %62 : vector<32x128xf32>
    %64 = arith.addf %46, %63 : vector<32x128xf32>
    %c126_i32 = arith.constant 126 : i32
    %65 = tpu.dynamic_rotate %5 by %c126_i32 dim 1 : vector<1x128xf32>, i32 -> vector<1x128xf32>
    %c2_i32_24 = arith.constant 2 : i32
    %66 = vector.broadcast %c2_i32_24 : i32 to vector<1x128xi32>
    %67 = arith.addi %0, %66 : vector<1x128xi32>
    %c0_i32_25 = arith.constant 0 : i32
    %68 = vector.broadcast %c0_i32_25 : i32 to vector<1x128xi32>
    %69 = arith.cmpi sge, %67, %68 : vector<1x128xi32>
    %c2_i32_26 = arith.constant 2 : i32
    %70 = vector.broadcast %c2_i32_26 : i32 to vector<1x128xi32>
    %71 = arith.addi %0, %70 : vector<1x128xi32>
    %c32_i32_27 = arith.constant 32 : i32
    %72 = vector.broadcast %c32_i32_27 : i32 to vector<1x128xi32>
    %73 = arith.cmpi slt, %71, %72 : vector<1x128xi32>
    %74 = arith.andi %69, %73 : vector<1x128xi1>
    %cst_28 = arith.constant 0.000000e+00 : f32
    %75 = vector.broadcast %cst_28 : f32 to vector<1x128xf32>
    %76 = arith.select %74, %65, %75 : vector<1x128xi1>, vector<1x128xf32>
    %c4 = arith.constant 4 : index
    %c0_29 = arith.constant 0 : index
    %c0_30 = arith.constant 0 : index
    %77 = vector.load %arg3[%c4, %c0_29, %c0_30] : memref<5x32x1xf32, #tpu.memory_space<vmem>>, vector<1x32x1xf32>
    %78 = vector.shape_cast %77 : vector<1x32x1xf32> to vector<32x1xf32>
    %79 = vector.broadcast %78 : vector<32x1xf32> to vector<32x128xf32>
    %80 = vector.broadcast %76 : vector<1x128xf32> to vector<32x128xf32>
    %81 = arith.mulf %79, %80 : vector<32x128xf32>
    %82 = arith.addf %64, %81 : vector<32x128xf32>
    %c0_31 = arith.constant 0 : index
    %c0_32 = arith.constant 0 : index
    %83 = vector.load %arg4[%c0_31, %c0_32] : memref<32x1xf32, #tpu.memory_space<vmem>>, vector<32x1xf32>
    %84 = vector.broadcast %83 : vector<32x1xf32> to vector<32x128xf32>
    %85 = arith.addf %82, %84 : vector<32x128xf32>
    %cst_33 = arith.constant 0.000000e+00 : f32
    %86 = vector.broadcast %cst_33 : f32 to vector<32x128xf32>
    %87 = arith.cmpf ogt, %85, %86 : vector<32x128xf32>
    %cst_34 = arith.constant 0.000000e+00 : f32
    %88 = vector.broadcast %cst_34 : f32 to vector<32x128xf32>
    %89 = arith.minimumf %85, %88 : vector<32x128xf32>
    %90 = math.exp %89 : vector<32x128xf32>
    %cst_35 = arith.constant 1.000000e+00 : f32
    %91 = vector.broadcast %cst_35 : f32 to vector<32x128xf32>
    %92 = arith.subf %90, %91 : vector<32x128xf32>
    %93 = arith.select %87, %85, %92 : vector<32x128xi1>, vector<32x128xf32>
    %c2_i32_36 = arith.constant 2 : i32
    %94 = tpu.dynamic_rotate %93 by %c2_i32_36 dim 1 : vector<32x128xf32>, i32 -> vector<32x128xf32>
    %c-2_i32_37 = arith.constant -2 : i32
    %95 = vector.broadcast %c-2_i32_37 : i32 to vector<1x128xi32>
    %96 = arith.addi %0, %95 : vector<1x128xi32>
    %c0_i32_38 = arith.constant 0 : i32
    %97 = vector.broadcast %c0_i32_38 : i32 to vector<1x128xi32>
    %98 = arith.cmpi sge, %96, %97 : vector<1x128xi32>
    %c-2_i32_39 = arith.constant -2 : i32
    %99 = vector.broadcast %c-2_i32_39 : i32 to vector<1x128xi32>
    %100 = arith.addi %0, %99 : vector<1x128xi32>
    %c32_i32_40 = arith.constant 32 : i32
    %101 = vector.broadcast %c32_i32_40 : i32 to vector<1x128xi32>
    %102 = arith.cmpi slt, %100, %101 : vector<1x128xi32>
    %103 = arith.andi %98, %102 : vector<1x128xi1>
    %cst_41 = arith.constant 0.000000e+00 : f32
    %104 = vector.shape_cast %103 : vector<1x128xi1> to vector<1x128xi1>
    %105 = vector.broadcast %104 : vector<1x128xi1> to vector<32x128xi1>
    %106 = vector.broadcast %cst_41 : f32 to vector<32x128xf32>
    %107 = arith.select %105, %94, %106 : vector<32x128xi1>, vector<32x128xf32>
    %c0_42 = arith.constant 0 : index
    %c0_43 = arith.constant 0 : index
    %c0_44 = arith.constant 0 : index
    %108 = vector.load %arg5[%c0_42, %c0_43, %c0_44] : memref<5x32x32xf32, #tpu.memory_space<vmem>>, vector<1x32x32xf32>
    %109 = vector.shape_cast %108 : vector<1x32x32xf32> to vector<32x32xf32>
    %cst_45 = arith.constant dense<0.000000e+00> : vector<32x128xf32>
    %110 = tpu.matmul %109, %107, %cst_45 {dimension_numbers = #tpu.dot_dimension_numbers<[1], [0], [0], [1], [0, 0, 1, 1], [], []>} : vector<32x32xf32>, vector<32x128xf32>, vector<32x128xf32> -> vector<32x128xf32>
    %c1_i32_46 = arith.constant 1 : i32
    %111 = tpu.dynamic_rotate %93 by %c1_i32_46 dim 1 : vector<32x128xf32>, i32 -> vector<32x128xf32>
    %c-1_i32_47 = arith.constant -1 : i32
    %112 = vector.broadcast %c-1_i32_47 : i32 to vector<1x128xi32>
    %113 = arith.addi %0, %112 : vector<1x128xi32>
    %c0_i32_48 = arith.constant 0 : i32
    %114 = vector.broadcast %c0_i32_48 : i32 to vector<1x128xi32>
    %115 = arith.cmpi sge, %113, %114 : vector<1x128xi32>
    %c-1_i32_49 = arith.constant -1 : i32
    %116 = vector.broadcast %c-1_i32_49 : i32 to vector<1x128xi32>
    %117 = arith.addi %0, %116 : vector<1x128xi32>
    %c32_i32_50 = arith.constant 32 : i32
    %118 = vector.broadcast %c32_i32_50 : i32 to vector<1x128xi32>
    %119 = arith.cmpi slt, %117, %118 : vector<1x128xi32>
    %120 = arith.andi %115, %119 : vector<1x128xi1>
    %cst_51 = arith.constant 0.000000e+00 : f32
    %121 = vector.shape_cast %120 : vector<1x128xi1> to vector<1x128xi1>
    %122 = vector.broadcast %121 : vector<1x128xi1> to vector<32x128xi1>
    %123 = vector.broadcast %cst_51 : f32 to vector<32x128xf32>
    %124 = arith.select %122, %111, %123 : vector<32x128xi1>, vector<32x128xf32>
    %c1_52 = arith.constant 1 : index
    %c0_53 = arith.constant 0 : index
    %c0_54 = arith.constant 0 : index
    %125 = vector.load %arg5[%c1_52, %c0_53, %c0_54] : memref<5x32x32xf32, #tpu.memory_space<vmem>>, vector<1x32x32xf32>
    %126 = vector.shape_cast %125 : vector<1x32x32xf32> to vector<32x32xf32>
    %cst_55 = arith.constant dense<0.000000e+00> : vector<32x128xf32>
    %127 = tpu.matmul %126, %124, %cst_55 {dimension_numbers = #tpu.dot_dimension_numbers<[1], [0], [0], [1], [0, 0, 1, 1], [], []>} : vector<32x32xf32>, vector<32x128xf32>, vector<32x128xf32> -> vector<32x128xf32>
    %128 = arith.addf %110, %127 : vector<32x128xf32>
    %c2_56 = arith.constant 2 : index
    %c0_57 = arith.constant 0 : index
    %c0_58 = arith.constant 0 : index
    %129 = vector.load %arg5[%c2_56, %c0_57, %c0_58] : memref<5x32x32xf32, #tpu.memory_space<vmem>>, vector<1x32x32xf32>
    %130 = vector.shape_cast %129 : vector<1x32x32xf32> to vector<32x32xf32>
    %cst_59 = arith.constant dense<0.000000e+00> : vector<32x128xf32>
    %131 = tpu.matmul %130, %93, %cst_59 {dimension_numbers = #tpu.dot_dimension_numbers<[1], [0], [0], [1], [0, 0, 1, 1], [], []>} : vector<32x32xf32>, vector<32x128xf32>, vector<32x128xf32> -> vector<32x128xf32>
    %132 = arith.addf %128, %131 : vector<32x128xf32>
    %c127_i32_60 = arith.constant 127 : i32
    %133 = tpu.dynamic_rotate %93 by %c127_i32_60 dim 1 : vector<32x128xf32>, i32 -> vector<32x128xf32>
    %c1_i32_61 = arith.constant 1 : i32
    %134 = vector.broadcast %c1_i32_61 : i32 to vector<1x128xi32>
    %135 = arith.addi %0, %134 : vector<1x128xi32>
    %c0_i32_62 = arith.constant 0 : i32
    %136 = vector.broadcast %c0_i32_62 : i32 to vector<1x128xi32>
    %137 = arith.cmpi sge, %135, %136 : vector<1x128xi32>
    %c1_i32_63 = arith.constant 1 : i32
    %138 = vector.broadcast %c1_i32_63 : i32 to vector<1x128xi32>
    %139 = arith.addi %0, %138 : vector<1x128xi32>
    %c32_i32_64 = arith.constant 32 : i32
    %140 = vector.broadcast %c32_i32_64 : i32 to vector<1x128xi32>
    %141 = arith.cmpi slt, %139, %140 : vector<1x128xi32>
    %142 = arith.andi %137, %141 : vector<1x128xi1>
    %cst_65 = arith.constant 0.000000e+00 : f32
    %143 = vector.shape_cast %142 : vector<1x128xi1> to vector<1x128xi1>
    %144 = vector.broadcast %143 : vector<1x128xi1> to vector<32x128xi1>
    %145 = vector.broadcast %cst_65 : f32 to vector<32x128xf32>
    %146 = arith.select %144, %133, %145 : vector<32x128xi1>, vector<32x128xf32>
    %c3_66 = arith.constant 3 : index
    %c0_67 = arith.constant 0 : index
    %c0_68 = arith.constant 0 : index
    %147 = vector.load %arg5[%c3_66, %c0_67, %c0_68] : memref<5x32x32xf32, #tpu.memory_space<vmem>>, vector<1x32x32xf32>
    %148 = vector.shape_cast %147 : vector<1x32x32xf32> to vector<32x32xf32>
    %cst_69 = arith.constant dense<0.000000e+00> : vector<32x128xf32>
    %149 = tpu.matmul %148, %146, %cst_69 {dimension_numbers = #tpu.dot_dimension_numbers<[1], [0], [0], [1], [0, 0, 1, 1], [], []>} : vector<32x32xf32>, vector<32x128xf32>, vector<32x128xf32> -> vector<32x128xf32>
    %150 = arith.addf %132, %149 : vector<32x128xf32>
    %c126_i32_70 = arith.constant 126 : i32
    %151 = tpu.dynamic_rotate %93 by %c126_i32_70 dim 1 : vector<32x128xf32>, i32 -> vector<32x128xf32>
    %c2_i32_71 = arith.constant 2 : i32
    %152 = vector.broadcast %c2_i32_71 : i32 to vector<1x128xi32>
    %153 = arith.addi %0, %152 : vector<1x128xi32>
    %c0_i32_72 = arith.constant 0 : i32
    %154 = vector.broadcast %c0_i32_72 : i32 to vector<1x128xi32>
    %155 = arith.cmpi sge, %153, %154 : vector<1x128xi32>
    %c2_i32_73 = arith.constant 2 : i32
    %156 = vector.broadcast %c2_i32_73 : i32 to vector<1x128xi32>
    %157 = arith.addi %0, %156 : vector<1x128xi32>
    %c32_i32_74 = arith.constant 32 : i32
    %158 = vector.broadcast %c32_i32_74 : i32 to vector<1x128xi32>
    %159 = arith.cmpi slt, %157, %158 : vector<1x128xi32>
    %160 = arith.andi %155, %159 : vector<1x128xi1>
    %cst_75 = arith.constant 0.000000e+00 : f32
    %161 = vector.shape_cast %160 : vector<1x128xi1> to vector<1x128xi1>
    %162 = vector.broadcast %161 : vector<1x128xi1> to vector<32x128xi1>
    %163 = vector.broadcast %cst_75 : f32 to vector<32x128xf32>
    %164 = arith.select %162, %151, %163 : vector<32x128xi1>, vector<32x128xf32>
    %c4_76 = arith.constant 4 : index
    %c0_77 = arith.constant 0 : index
    %c0_78 = arith.constant 0 : index
    %165 = vector.load %arg5[%c4_76, %c0_77, %c0_78] : memref<5x32x32xf32, #tpu.memory_space<vmem>>, vector<1x32x32xf32>
    %166 = vector.shape_cast %165 : vector<1x32x32xf32> to vector<32x32xf32>
    %cst_79 = arith.constant dense<0.000000e+00> : vector<32x128xf32>
    %167 = tpu.matmul %166, %164, %cst_79 {dimension_numbers = #tpu.dot_dimension_numbers<[1], [0], [0], [1], [0, 0, 1, 1], [], []>} : vector<32x32xf32>, vector<32x128xf32>, vector<32x128xf32> -> vector<32x128xf32>
    %168 = arith.addf %150, %167 : vector<32x128xf32>
    %c0_80 = arith.constant 0 : index
    %c0_81 = arith.constant 0 : index
    %169 = vector.load %arg6[%c0_80, %c0_81] : memref<32x1xf32, #tpu.memory_space<vmem>>, vector<32x1xf32>
    %170 = vector.broadcast %169 : vector<32x1xf32> to vector<32x128xf32>
    %171 = arith.addf %168, %170 : vector<32x128xf32>
    %cst_82 = arith.constant 0.000000e+00 : f32
    %172 = vector.broadcast %cst_82 : f32 to vector<32x128xf32>
    %173 = arith.cmpf ogt, %171, %172 : vector<32x128xf32>
    %cst_83 = arith.constant 0.000000e+00 : f32
    %174 = vector.broadcast %cst_83 : f32 to vector<32x128xf32>
    %175 = arith.minimumf %171, %174 : vector<32x128xf32>
    %176 = math.exp %175 : vector<32x128xf32>
    %cst_84 = arith.constant 1.000000e+00 : f32
    %177 = vector.broadcast %cst_84 : f32 to vector<32x128xf32>
    %178 = arith.subf %176, %177 : vector<32x128xf32>
    %179 = arith.select %173, %171, %178 : vector<32x128xi1>, vector<32x128xf32>
    %c0_85 = arith.constant 0 : index
    %c0_86 = arith.constant 0 : index
    %c0_87 = arith.constant 0 : index
    %180 = vector.load %arg7[%c0_85, %c0_86, %c0_87] : memref<1x3x32xf32, #tpu.memory_space<vmem>>, vector<1x3x32xf32>
    %181 = vector.shape_cast %180 : vector<1x3x32xf32> to vector<3x32xf32>
    %cst_88 = arith.constant dense<0.000000e+00> : vector<3x128xf32>
    %182 = tpu.matmul %181, %179, %cst_88 {dimension_numbers = #tpu.dot_dimension_numbers<[1], [0], [0], [1], [0, 0, 1, 1], [], []>} : vector<3x32xf32>, vector<32x128xf32>, vector<3x128xf32> -> vector<3x128xf32>
    %c0_89 = arith.constant 0 : index
    %c0_90 = arith.constant 0 : index
    %183 = vector.load %arg8[%c0_89, %c0_90] : memref<3x1xf32, #tpu.memory_space<vmem>>, vector<3x1xf32>
    %184 = vector.broadcast %183 : vector<3x1xf32> to vector<3x128xf32>
    %185 = arith.addf %182, %184 : vector<3x128xf32>
    %c0_91 = arith.constant 0 : index
    %c0_92 = arith.constant 0 : index
    %186 = vector.load %arg9[%c0_91, %c0_92] : memref<3x128xf32, #tpu.memory_space<vmem>>, vector<3x128xf32>
    tpu.vector_store %arg9[%c0_91, %c0_92], %185 {strides = array<i32>} : memref<3x128xf32, #tpu.memory_space<vmem>>, vector<3x128xf32>,
    return
  }
  func.func @transform_0(%arg0: i32) -> (i32, i32) {
    %c0_i32 = arith.constant 0 : i32
    %c0_i32_0 = arith.constant 0 : i32
    return %c0_i32, %arg0 : i32, i32
  }
  func.func @transform_1(%arg0: i32) -> (i32, i32) {
    %c0_i32 = arith.constant 0 : i32
    %c0_i32_0 = arith.constant 0 : i32
    return %c0_i32, %arg0 : i32, i32
  }
  func.func @transform_2(%arg0: i32) -> (i32, i32, i32) {
    %c0_i32 = arith.constant 0 : i32
    %c0_i32_0 = arith.constant 0 : i32
    %c0_i32_1 = arith.constant 0 : i32
    %c0_i32_2 = arith.constant 0 : i32
    return %c0_i32, %c0_i32_0, %c0_i32_1 : i32, i32, i32
  }
  func.func @transform_3(%arg0: i32) -> (i32, i32) {
    %c0_i32 = arith.constant 0 : i32
    %c0_i32_0 = arith.constant 0 : i32
    %c0_i32_1 = arith.constant 0 : i32
    return %c0_i32, %c0_i32_0 : i32, i32
  }
  func.func @transform_4(%arg0: i32) -> (i32, i32, i32) {
    %c0_i32 = arith.constant 0 : i32
    %c0_i32_0 = arith.constant 0 : i32
    %c0_i32_1 = arith.constant 0 : i32
    %c0_i32_2 = arith.constant 0 : i32
    return %c0_i32, %c0_i32_0, %c0_i32_1 : i32, i32, i32
  }
  func.func @transform_5(%arg0: i32) -> (i32, i32) {
    %c0_i32 = arith.constant 0 : i32
    %c0_i32_0 = arith.constant 0 : i32
    %c0_i32_1 = arith.constant 0 : i32
    return %c0_i32, %c0_i32_0 : i32, i32
  }
  func.func @transform_6(%arg0: i32) -> (i32, i32, i32) {
    %c0_i32 = arith.constant 0 : i32
    %c0_i32_0 = arith.constant 0 : i32
    %c0_i32_1 = arith.constant 0 : i32
    %c0_i32_2 = arith.constant 0 : i32
    return %c0_i32, %c0_i32_0, %c0_i32_1 : i32, i32, i32
  }
  func.func @transform_7(%arg0: i32) -> (i32, i32) {
    %c0_i32 = arith.constant 0 : i32
    %c0_i32_0 = arith.constant 0 : i32
    %c0_i32_1 = arith.constant 0 : i32
    return %c0_i32, %c0_i32_0 : i32, i32
  }
  func.func @transform_8(%arg0: i32) -> (i32, i32) {
    %c0_i32 = arith.constant 0 : i32
    %c0_i32_0 = arith.constant 0 : i32
    return %c0_i32, %arg0 : i32, i32
  }
}

module attributes {stable_mosaic.version = 11 : i64} {
  func.func @_decoder_kernel(%arg0: i32, %arg1: memref<2xf32, #tpu.memory_space<smem>>, %arg2: memref<3x128xf32, #tpu.memory_space<vmem>>, %arg3: memref<3x128xf32, #tpu.memory_space<vmem>>, %arg4: memref<1x128xi32, #tpu.memory_space<vmem>>, %arg5: memref<5x32x3xf32, #tpu.memory_space<vmem>>, %arg6: memref<32x1xf32, #tpu.memory_space<vmem>>, %arg7: memref<5x32x32xf32, #tpu.memory_space<vmem>>, %arg8: memref<32x1xf32, #tpu.memory_space<vmem>>, %arg9: memref<1x1x32xf32, #tpu.memory_space<vmem>>, %arg10: memref<1x1xf32, #tpu.memory_space<vmem>>, %arg11: memref<1x128xf32, #tpu.memory_space<vmem>>) attributes {dimension_semantics = [#tpu.dimension_semantics<parallel>], iteration_bounds = array<i64: 2>, scalar_prefetch = 1 : i64, scratch_operands = 0 : i64, tpu.core_type = #tpu.core_type<tc>, window_params = [{transform_indices = @transform_0, window_bounds = array<i64: 3, 128>}, {transform_indices = @transform_1, window_bounds = array<i64: 3, 128>}, {transform_indices = @transform_2, window_bounds = array<i64: 1, 128>}, {pipeline_mode = #tpu.pipeline_mode<synchronous>, transform_indices = @transform_3, window_bounds = array<i64: 5, 32, 3>}, {pipeline_mode = #tpu.pipeline_mode<synchronous>, transform_indices = @transform_4, window_bounds = array<i64: 32, 1>}, {pipeline_mode = #tpu.pipeline_mode<synchronous>, transform_indices = @transform_5, window_bounds = array<i64: 5, 32, 32>}, {pipeline_mode = #tpu.pipeline_mode<synchronous>, transform_indices = @transform_6, window_bounds = array<i64: 32, 1>}, {pipeline_mode = #tpu.pipeline_mode<synchronous>, transform_indices = @transform_7, window_bounds = array<i64: 1, 1, 32>}, {pipeline_mode = #tpu.pipeline_mode<synchronous>, transform_indices = @transform_8, window_bounds = array<i64: 1, 1>}, {transform_indices = @transform_9, window_bounds = array<i64: 1, 128>}]} {
    %c0 = arith.constant 0 : index
    %c0_0 = arith.constant 0 : index
    %0 = vector.load %arg4[%c0, %c0_0] : memref<1x128xi32, #tpu.memory_space<vmem>>, vector<1x128xi32>
    %c0_1 = arith.constant 0 : index
    %1 = memref.load %arg1[%c0_1] : memref<2xf32, #tpu.memory_space<smem>>
    %c1 = arith.constant 1 : index
    %2 = memref.load %arg1[%c1] : memref<2xf32, #tpu.memory_space<smem>>
    %c0_2 = arith.constant 0 : index
    %c0_3 = arith.constant 0 : index
    %3 = vector.load %arg2[%c0_2, %c0_3] : memref<3x128xf32, #tpu.memory_space<vmem>>, vector<3x128xf32>
    %4 = vector.broadcast %1 : f32 to vector<3x128xf32>
    %5 = arith.subf %3, %4 : vector<3x128xf32>
    %6 = vector.broadcast %2 : f32 to vector<3x128xf32>
    %7 = arith.mulf %5, %6 : vector<3x128xf32>
    %c0_4 = arith.constant 0 : index
    %c0_5 = arith.constant 0 : index
    %8 = vector.load %arg3[%c0_4, %c0_5] : memref<3x128xf32, #tpu.memory_space<vmem>>, vector<3x128xf32>
    %9 = arith.addf %7, %8 : vector<3x128xf32>
    %c2_i32 = arith.constant 2 : i32
    %10 = tpu.dynamic_rotate %9 by %c2_i32 dim 1 : vector<3x128xf32>, i32 -> vector<3x128xf32>
    %c-2_i32 = arith.constant -2 : i32
    %11 = vector.broadcast %c-2_i32 : i32 to vector<1x128xi32>
    %12 = arith.addi %0, %11 : vector<1x128xi32>
    %c0_i32 = arith.constant 0 : i32
    %13 = vector.broadcast %c0_i32 : i32 to vector<1x128xi32>
    %14 = arith.cmpi sge, %12, %13 : vector<1x128xi32>
    %c-2_i32_6 = arith.constant -2 : i32
    %15 = vector.broadcast %c-2_i32_6 : i32 to vector<1x128xi32>
    %16 = arith.addi %0, %15 : vector<1x128xi32>
    %c32_i32 = arith.constant 32 : i32
    %17 = vector.broadcast %c32_i32 : i32 to vector<1x128xi32>
    %18 = arith.cmpi slt, %16, %17 : vector<1x128xi32>
    %19 = arith.andi %14, %18 : vector<1x128xi1>
    %cst = arith.constant 0.000000e+00 : f32
    %20 = vector.shape_cast %19 : vector<1x128xi1> to vector<1x128xi1>
    %21 = vector.broadcast %20 : vector<1x128xi1> to vector<3x128xi1>
    %22 = vector.broadcast %cst : f32 to vector<3x128xf32>
    %23 = arith.select %21, %10, %22 : vector<3x128xi1>, vector<3x128xf32>
    %c0_7 = arith.constant 0 : index
    %c0_8 = arith.constant 0 : index
    %c0_9 = arith.constant 0 : index
    %24 = vector.load %arg5[%c0_7, %c0_8, %c0_9] : memref<5x32x3xf32, #tpu.memory_space<vmem>>, vector<1x32x3xf32>
    %25 = vector.shape_cast %24 : vector<1x32x3xf32> to vector<32x3xf32>
    %26 = vector.extract_strided_slice %25 {offsets = [0, 0], sizes = [32, 1], strides = [1, 1]} : vector<32x3xf32> to vector<32x1xf32>
    %27 = vector.extract_strided_slice %23 {offsets = [0, 0], sizes = [1, 128], strides = [1, 1]} : vector<3x128xf32> to vector<1x128xf32>
    %28 = vector.broadcast %26 : vector<32x1xf32> to vector<32x128xf32>
    %29 = vector.broadcast %27 : vector<1x128xf32> to vector<32x128xf32>
    %30 = arith.mulf %28, %29 : vector<32x128xf32>
    %31 = vector.extract_strided_slice %25 {offsets = [0, 1], sizes = [32, 1], strides = [1, 1]} : vector<32x3xf32> to vector<32x1xf32>
    %32 = vector.extract_strided_slice %23 {offsets = [1, 0], sizes = [1, 128], strides = [1, 1]} : vector<3x128xf32> to vector<1x128xf32>
    %33 = vector.broadcast %31 : vector<32x1xf32> to vector<32x128xf32>
    %34 = vector.broadcast %32 : vector<1x128xf32> to vector<32x128xf32>
    %35 = arith.mulf %33, %34 : vector<32x128xf32>
    %36 = arith.addf %30, %35 : vector<32x128xf32>
    %37 = vector.extract_strided_slice %25 {offsets = [0, 2], sizes = [32, 1], strides = [1, 1]} : vector<32x3xf32> to vector<32x1xf32>
    %38 = vector.extract_strided_slice %23 {offsets = [2, 0], sizes = [1, 128], strides = [1, 1]} : vector<3x128xf32> to vector<1x128xf32>
    %39 = vector.broadcast %37 : vector<32x1xf32> to vector<32x128xf32>
    %40 = vector.broadcast %38 : vector<1x128xf32> to vector<32x128xf32>
    %41 = arith.mulf %39, %40 : vector<32x128xf32>
    %42 = arith.addf %36, %41 : vector<32x128xf32>
    %c1_i32 = arith.constant 1 : i32
    %43 = tpu.dynamic_rotate %9 by %c1_i32 dim 1 : vector<3x128xf32>, i32 -> vector<3x128xf32>
    %c-1_i32 = arith.constant -1 : i32
    %44 = vector.broadcast %c-1_i32 : i32 to vector<1x128xi32>
    %45 = arith.addi %0, %44 : vector<1x128xi32>
    %c0_i32_10 = arith.constant 0 : i32
    %46 = vector.broadcast %c0_i32_10 : i32 to vector<1x128xi32>
    %47 = arith.cmpi sge, %45, %46 : vector<1x128xi32>
    %c-1_i32_11 = arith.constant -1 : i32
    %48 = vector.broadcast %c-1_i32_11 : i32 to vector<1x128xi32>
    %49 = arith.addi %0, %48 : vector<1x128xi32>
    %c32_i32_12 = arith.constant 32 : i32
    %50 = vector.broadcast %c32_i32_12 : i32 to vector<1x128xi32>
    %51 = arith.cmpi slt, %49, %50 : vector<1x128xi32>
    %52 = arith.andi %47, %51 : vector<1x128xi1>
    %cst_13 = arith.constant 0.000000e+00 : f32
    %53 = vector.shape_cast %52 : vector<1x128xi1> to vector<1x128xi1>
    %54 = vector.broadcast %53 : vector<1x128xi1> to vector<3x128xi1>
    %55 = vector.broadcast %cst_13 : f32 to vector<3x128xf32>
    %56 = arith.select %54, %43, %55 : vector<3x128xi1>, vector<3x128xf32>
    %c1_14 = arith.constant 1 : index
    %c0_15 = arith.constant 0 : index
    %c0_16 = arith.constant 0 : index
    %57 = vector.load %arg5[%c1_14, %c0_15, %c0_16] : memref<5x32x3xf32, #tpu.memory_space<vmem>>, vector<1x32x3xf32>
    %58 = vector.shape_cast %57 : vector<1x32x3xf32> to vector<32x3xf32>
    %59 = vector.extract_strided_slice %58 {offsets = [0, 0], sizes = [32, 1], strides = [1, 1]} : vector<32x3xf32> to vector<32x1xf32>
    %60 = vector.extract_strided_slice %56 {offsets = [0, 0], sizes = [1, 128], strides = [1, 1]} : vector<3x128xf32> to vector<1x128xf32>
    %61 = vector.broadcast %59 : vector<32x1xf32> to vector<32x128xf32>
    %62 = vector.broadcast %60 : vector<1x128xf32> to vector<32x128xf32>
    %63 = arith.mulf %61, %62 : vector<32x128xf32>
    %64 = vector.extract_strided_slice %58 {offsets = [0, 1], sizes = [32, 1], strides = [1, 1]} : vector<32x3xf32> to vector<32x1xf32>
    %65 = vector.extract_strided_slice %56 {offsets = [1, 0], sizes = [1, 128], strides = [1, 1]} : vector<3x128xf32> to vector<1x128xf32>
    %66 = vector.broadcast %64 : vector<32x1xf32> to vector<32x128xf32>
    %67 = vector.broadcast %65 : vector<1x128xf32> to vector<32x128xf32>
    %68 = arith.mulf %66, %67 : vector<32x128xf32>
    %69 = arith.addf %63, %68 : vector<32x128xf32>
    %70 = vector.extract_strided_slice %58 {offsets = [0, 2], sizes = [32, 1], strides = [1, 1]} : vector<32x3xf32> to vector<32x1xf32>
    %71 = vector.extract_strided_slice %56 {offsets = [2, 0], sizes = [1, 128], strides = [1, 1]} : vector<3x128xf32> to vector<1x128xf32>
    %72 = vector.broadcast %70 : vector<32x1xf32> to vector<32x128xf32>
    %73 = vector.broadcast %71 : vector<1x128xf32> to vector<32x128xf32>
    %74 = arith.mulf %72, %73 : vector<32x128xf32>
    %75 = arith.addf %69, %74 : vector<32x128xf32>
    %76 = arith.addf %42, %75 : vector<32x128xf32>
    %c2 = arith.constant 2 : index
    %c0_17 = arith.constant 0 : index
    %c0_18 = arith.constant 0 : index
    %77 = vector.load %arg5[%c2, %c0_17, %c0_18] : memref<5x32x3xf32, #tpu.memory_space<vmem>>, vector<1x32x3xf32>
    %78 = vector.shape_cast %77 : vector<1x32x3xf32> to vector<32x3xf32>
    %79 = vector.extract_strided_slice %78 {offsets = [0, 0], sizes = [32, 1], strides = [1, 1]} : vector<32x3xf32> to vector<32x1xf32>
    %80 = vector.extract_strided_slice %9 {offsets = [0, 0], sizes = [1, 128], strides = [1, 1]} : vector<3x128xf32> to vector<1x128xf32>
    %81 = vector.broadcast %79 : vector<32x1xf32> to vector<32x128xf32>
    %82 = vector.broadcast %80 : vector<1x128xf32> to vector<32x128xf32>
    %83 = arith.mulf %81, %82 : vector<32x128xf32>
    %84 = vector.extract_strided_slice %78 {offsets = [0, 1], sizes = [32, 1], strides = [1, 1]} : vector<32x3xf32> to vector<32x1xf32>
    %85 = vector.extract_strided_slice %9 {offsets = [1, 0], sizes = [1, 128], strides = [1, 1]} : vector<3x128xf32> to vector<1x128xf32>
    %86 = vector.broadcast %84 : vector<32x1xf32> to vector<32x128xf32>
    %87 = vector.broadcast %85 : vector<1x128xf32> to vector<32x128xf32>
    %88 = arith.mulf %86, %87 : vector<32x128xf32>
    %89 = arith.addf %83, %88 : vector<32x128xf32>
    %90 = vector.extract_strided_slice %78 {offsets = [0, 2], sizes = [32, 1], strides = [1, 1]} : vector<32x3xf32> to vector<32x1xf32>
    %91 = vector.extract_strided_slice %9 {offsets = [2, 0], sizes = [1, 128], strides = [1, 1]} : vector<3x128xf32> to vector<1x128xf32>
    %92 = vector.broadcast %90 : vector<32x1xf32> to vector<32x128xf32>
    %93 = vector.broadcast %91 : vector<1x128xf32> to vector<32x128xf32>
    %94 = arith.mulf %92, %93 : vector<32x128xf32>
    %95 = arith.addf %89, %94 : vector<32x128xf32>
    %96 = arith.addf %76, %95 : vector<32x128xf32>
    %c127_i32 = arith.constant 127 : i32
    %97 = tpu.dynamic_rotate %9 by %c127_i32 dim 1 : vector<3x128xf32>, i32 -> vector<3x128xf32>
    %c1_i32_19 = arith.constant 1 : i32
    %98 = vector.broadcast %c1_i32_19 : i32 to vector<1x128xi32>
    %99 = arith.addi %0, %98 : vector<1x128xi32>
    %c0_i32_20 = arith.constant 0 : i32
    %100 = vector.broadcast %c0_i32_20 : i32 to vector<1x128xi32>
    %101 = arith.cmpi sge, %99, %100 : vector<1x128xi32>
    %c1_i32_21 = arith.constant 1 : i32
    %102 = vector.broadcast %c1_i32_21 : i32 to vector<1x128xi32>
    %103 = arith.addi %0, %102 : vector<1x128xi32>
    %c32_i32_22 = arith.constant 32 : i32
    %104 = vector.broadcast %c32_i32_22 : i32 to vector<1x128xi32>
    %105 = arith.cmpi slt, %103, %104 : vector<1x128xi32>
    %106 = arith.andi %101, %105 : vector<1x128xi1>
    %cst_23 = arith.constant 0.000000e+00 : f32
    %107 = vector.shape_cast %106 : vector<1x128xi1> to vector<1x128xi1>
    %108 = vector.broadcast %107 : vector<1x128xi1> to vector<3x128xi1>
    %109 = vector.broadcast %cst_23 : f32 to vector<3x128xf32>
    %110 = arith.select %108, %97, %109 : vector<3x128xi1>, vector<3x128xf32>
    %c3 = arith.constant 3 : index
    %c0_24 = arith.constant 0 : index
    %c0_25 = arith.constant 0 : index
    %111 = vector.load %arg5[%c3, %c0_24, %c0_25] : memref<5x32x3xf32, #tpu.memory_space<vmem>>, vector<1x32x3xf32>
    %112 = vector.shape_cast %111 : vector<1x32x3xf32> to vector<32x3xf32>
    %113 = vector.extract_strided_slice %112 {offsets = [0, 0], sizes = [32, 1], strides = [1, 1]} : vector<32x3xf32> to vector<32x1xf32>
    %114 = vector.extract_strided_slice %110 {offsets = [0, 0], sizes = [1, 128], strides = [1, 1]} : vector<3x128xf32> to vector<1x128xf32>
    %115 = vector.broadcast %113 : vector<32x1xf32> to vector<32x128xf32>
    %116 = vector.broadcast %114 : vector<1x128xf32> to vector<32x128xf32>
    %117 = arith.mulf %115, %116 : vector<32x128xf32>
    %118 = vector.extract_strided_slice %112 {offsets = [0, 1], sizes = [32, 1], strides = [1, 1]} : vector<32x3xf32> to vector<32x1xf32>
    %119 = vector.extract_strided_slice %110 {offsets = [1, 0], sizes = [1, 128], strides = [1, 1]} : vector<3x128xf32> to vector<1x128xf32>
    %120 = vector.broadcast %118 : vector<32x1xf32> to vector<32x128xf32>
    %121 = vector.broadcast %119 : vector<1x128xf32> to vector<32x128xf32>
    %122 = arith.mulf %120, %121 : vector<32x128xf32>
    %123 = arith.addf %117, %122 : vector<32x128xf32>
    %124 = vector.extract_strided_slice %112 {offsets = [0, 2], sizes = [32, 1], strides = [1, 1]} : vector<32x3xf32> to vector<32x1xf32>
    %125 = vector.extract_strided_slice %110 {offsets = [2, 0], sizes = [1, 128], strides = [1, 1]} : vector<3x128xf32> to vector<1x128xf32>
    %126 = vector.broadcast %124 : vector<32x1xf32> to vector<32x128xf32>
    %127 = vector.broadcast %125 : vector<1x128xf32> to vector<32x128xf32>
    %128 = arith.mulf %126, %127 : vector<32x128xf32>
    %129 = arith.addf %123, %128 : vector<32x128xf32>
    %130 = arith.addf %96, %129 : vector<32x128xf32>
    %c126_i32 = arith.constant 126 : i32
    %131 = tpu.dynamic_rotate %9 by %c126_i32 dim 1 : vector<3x128xf32>, i32 -> vector<3x128xf32>
    %c2_i32_26 = arith.constant 2 : i32
    %132 = vector.broadcast %c2_i32_26 : i32 to vector<1x128xi32>
    %133 = arith.addi %0, %132 : vector<1x128xi32>
    %c0_i32_27 = arith.constant 0 : i32
    %134 = vector.broadcast %c0_i32_27 : i32 to vector<1x128xi32>
    %135 = arith.cmpi sge, %133, %134 : vector<1x128xi32>
    %c2_i32_28 = arith.constant 2 : i32
    %136 = vector.broadcast %c2_i32_28 : i32 to vector<1x128xi32>
    %137 = arith.addi %0, %136 : vector<1x128xi32>
    %c32_i32_29 = arith.constant 32 : i32
    %138 = vector.broadcast %c32_i32_29 : i32 to vector<1x128xi32>
    %139 = arith.cmpi slt, %137, %138 : vector<1x128xi32>
    %140 = arith.andi %135, %139 : vector<1x128xi1>
    %cst_30 = arith.constant 0.000000e+00 : f32
    %141 = vector.shape_cast %140 : vector<1x128xi1> to vector<1x128xi1>
    %142 = vector.broadcast %141 : vector<1x128xi1> to vector<3x128xi1>
    %143 = vector.broadcast %cst_30 : f32 to vector<3x128xf32>
    %144 = arith.select %142, %131, %143 : vector<3x128xi1>, vector<3x128xf32>
    %c4 = arith.constant 4 : index
    %c0_31 = arith.constant 0 : index
    %c0_32 = arith.constant 0 : index
    %145 = vector.load %arg5[%c4, %c0_31, %c0_32] : memref<5x32x3xf32, #tpu.memory_space<vmem>>, vector<1x32x3xf32>
    %146 = vector.shape_cast %145 : vector<1x32x3xf32> to vector<32x3xf32>
    %147 = vector.extract_strided_slice %146 {offsets = [0, 0], sizes = [32, 1], strides = [1, 1]} : vector<32x3xf32> to vector<32x1xf32>
    %148 = vector.extract_strided_slice %144 {offsets = [0, 0], sizes = [1, 128], strides = [1, 1]} : vector<3x128xf32> to vector<1x128xf32>
    %149 = vector.broadcast %147 : vector<32x1xf32> to vector<32x128xf32>
    %150 = vector.broadcast %148 : vector<1x128xf32> to vector<32x128xf32>
    %151 = arith.mulf %149, %150 : vector<32x128xf32>
    %152 = vector.extract_strided_slice %146 {offsets = [0, 1], sizes = [32, 1], strides = [1, 1]} : vector<32x3xf32> to vector<32x1xf32>
    %153 = vector.extract_strided_slice %144 {offsets = [1, 0], sizes = [1, 128], strides = [1, 1]} : vector<3x128xf32> to vector<1x128xf32>
    %154 = vector.broadcast %152 : vector<32x1xf32> to vector<32x128xf32>
    %155 = vector.broadcast %153 : vector<1x128xf32> to vector<32x128xf32>
    %156 = arith.mulf %154, %155 : vector<32x128xf32>
    %157 = arith.addf %151, %156 : vector<32x128xf32>
    %158 = vector.extract_strided_slice %146 {offsets = [0, 2], sizes = [32, 1], strides = [1, 1]} : vector<32x3xf32> to vector<32x1xf32>
    %159 = vector.extract_strided_slice %144 {offsets = [2, 0], sizes = [1, 128], strides = [1, 1]} : vector<3x128xf32> to vector<1x128xf32>
    %160 = vector.broadcast %158 : vector<32x1xf32> to vector<32x128xf32>
    %161 = vector.broadcast %159 : vector<1x128xf32> to vector<32x128xf32>
    %162 = arith.mulf %160, %161 : vector<32x128xf32>
    %163 = arith.addf %157, %162 : vector<32x128xf32>
    %164 = arith.addf %130, %163 : vector<32x128xf32>
    %c0_33 = arith.constant 0 : index
    %c0_34 = arith.constant 0 : index
    %165 = vector.load %arg6[%c0_33, %c0_34] : memref<32x1xf32, #tpu.memory_space<vmem>>, vector<32x1xf32>
    %166 = vector.broadcast %165 : vector<32x1xf32> to vector<32x128xf32>
    %167 = arith.addf %164, %166 : vector<32x128xf32>
    %cst_35 = arith.constant 0.000000e+00 : f32
    %168 = vector.broadcast %cst_35 : f32 to vector<32x128xf32>
    %169 = arith.cmpf ogt, %167, %168 : vector<32x128xf32>
    %cst_36 = arith.constant 0.000000e+00 : f32
    %170 = vector.broadcast %cst_36 : f32 to vector<32x128xf32>
    %171 = arith.minimumf %167, %170 : vector<32x128xf32>
    %172 = math.exp %171 : vector<32x128xf32>
    %cst_37 = arith.constant 1.000000e+00 : f32
    %173 = vector.broadcast %cst_37 : f32 to vector<32x128xf32>
    %174 = arith.subf %172, %173 : vector<32x128xf32>
    %175 = arith.select %169, %167, %174 : vector<32x128xi1>, vector<32x128xf32>
    %c2_i32_38 = arith.constant 2 : i32
    %176 = tpu.dynamic_rotate %175 by %c2_i32_38 dim 1 : vector<32x128xf32>, i32 -> vector<32x128xf32>
    %c-2_i32_39 = arith.constant -2 : i32
    %177 = vector.broadcast %c-2_i32_39 : i32 to vector<1x128xi32>
    %178 = arith.addi %0, %177 : vector<1x128xi32>
    %c0_i32_40 = arith.constant 0 : i32
    %179 = vector.broadcast %c0_i32_40 : i32 to vector<1x128xi32>
    %180 = arith.cmpi sge, %178, %179 : vector<1x128xi32>
    %c-2_i32_41 = arith.constant -2 : i32
    %181 = vector.broadcast %c-2_i32_41 : i32 to vector<1x128xi32>
    %182 = arith.addi %0, %181 : vector<1x128xi32>
    %c32_i32_42 = arith.constant 32 : i32
    %183 = vector.broadcast %c32_i32_42 : i32 to vector<1x128xi32>
    %184 = arith.cmpi slt, %182, %183 : vector<1x128xi32>
    %185 = arith.andi %180, %184 : vector<1x128xi1>
    %cst_43 = arith.constant 0.000000e+00 : f32
    %186 = vector.shape_cast %185 : vector<1x128xi1> to vector<1x128xi1>
    %187 = vector.broadcast %186 : vector<1x128xi1> to vector<32x128xi1>
    %188 = vector.broadcast %cst_43 : f32 to vector<32x128xf32>
    %189 = arith.select %187, %176, %188 : vector<32x128xi1>, vector<32x128xf32>
    %c0_44 = arith.constant 0 : index
    %c0_45 = arith.constant 0 : index
    %c0_46 = arith.constant 0 : index
    %190 = vector.load %arg7[%c0_44, %c0_45, %c0_46] : memref<5x32x32xf32, #tpu.memory_space<vmem>>, vector<1x32x32xf32>
    %191 = vector.shape_cast %190 : vector<1x32x32xf32> to vector<32x32xf32>
    %cst_47 = arith.constant dense<0.000000e+00> : vector<32x128xf32>
    %192 = tpu.matmul %191, %189, %cst_47 {dimension_numbers = #tpu.dot_dimension_numbers<[1], [0], [0], [1], [0, 0, 1, 1], [], []>} : vector<32x32xf32>, vector<32x128xf32>, vector<32x128xf32> -> vector<32x128xf32>
    %c1_i32_48 = arith.constant 1 : i32
    %193 = tpu.dynamic_rotate %175 by %c1_i32_48 dim 1 : vector<32x128xf32>, i32 -> vector<32x128xf32>
    %c-1_i32_49 = arith.constant -1 : i32
    %194 = vector.broadcast %c-1_i32_49 : i32 to vector<1x128xi32>
    %195 = arith.addi %0, %194 : vector<1x128xi32>
    %c0_i32_50 = arith.constant 0 : i32
    %196 = vector.broadcast %c0_i32_50 : i32 to vector<1x128xi32>
    %197 = arith.cmpi sge, %195, %196 : vector<1x128xi32>
    %c-1_i32_51 = arith.constant -1 : i32
    %198 = vector.broadcast %c-1_i32_51 : i32 to vector<1x128xi32>
    %199 = arith.addi %0, %198 : vector<1x128xi32>
    %c32_i32_52 = arith.constant 32 : i32
    %200 = vector.broadcast %c32_i32_52 : i32 to vector<1x128xi32>
    %201 = arith.cmpi slt, %199, %200 : vector<1x128xi32>
    %202 = arith.andi %197, %201 : vector<1x128xi1>
    %cst_53 = arith.constant 0.000000e+00 : f32
    %203 = vector.shape_cast %202 : vector<1x128xi1> to vector<1x128xi1>
    %204 = vector.broadcast %203 : vector<1x128xi1> to vector<32x128xi1>
    %205 = vector.broadcast %cst_53 : f32 to vector<32x128xf32>
    %206 = arith.select %204, %193, %205 : vector<32x128xi1>, vector<32x128xf32>
    %c1_54 = arith.constant 1 : index
    %c0_55 = arith.constant 0 : index
    %c0_56 = arith.constant 0 : index
    %207 = vector.load %arg7[%c1_54, %c0_55, %c0_56] : memref<5x32x32xf32, #tpu.memory_space<vmem>>, vector<1x32x32xf32>
    %208 = vector.shape_cast %207 : vector<1x32x32xf32> to vector<32x32xf32>
    %cst_57 = arith.constant dense<0.000000e+00> : vector<32x128xf32>
    %209 = tpu.matmul %208, %206, %cst_57 {dimension_numbers = #tpu.dot_dimension_numbers<[1], [0], [0], [1], [0, 0, 1, 1], [], []>} : vector<32x32xf32>, vector<32x128xf32>, vector<32x128xf32> -> vector<32x128xf32>
    %210 = arith.addf %192, %209 : vector<32x128xf32>
    %c2_58 = arith.constant 2 : index
    %c0_59 = arith.constant 0 : index
    %c0_60 = arith.constant 0 : index
    %211 = vector.load %arg7[%c2_58, %c0_59, %c0_60] : memref<5x32x32xf32, #tpu.memory_space<vmem>>, vector<1x32x32xf32>
    %212 = vector.shape_cast %211 : vector<1x32x32xf32> to vector<32x32xf32>
    %cst_61 = arith.constant dense<0.000000e+00> : vector<32x128xf32>
    %213 = tpu.matmul %212, %175, %cst_61 {dimension_numbers = #tpu.dot_dimension_numbers<[1], [0], [0], [1], [0, 0, 1, 1], [], []>} : vector<32x32xf32>, vector<32x128xf32>, vector<32x128xf32> -> vector<32x128xf32>
    %214 = arith.addf %210, %213 : vector<32x128xf32>
    %c127_i32_62 = arith.constant 127 : i32
    %215 = tpu.dynamic_rotate %175 by %c127_i32_62 dim 1 : vector<32x128xf32>, i32 -> vector<32x128xf32>
    %c1_i32_63 = arith.constant 1 : i32
    %216 = vector.broadcast %c1_i32_63 : i32 to vector<1x128xi32>
    %217 = arith.addi %0, %216 : vector<1x128xi32>
    %c0_i32_64 = arith.constant 0 : i32
    %218 = vector.broadcast %c0_i32_64 : i32 to vector<1x128xi32>
    %219 = arith.cmpi sge, %217, %218 : vector<1x128xi32>
    %c1_i32_65 = arith.constant 1 : i32
    %220 = vector.broadcast %c1_i32_65 : i32 to vector<1x128xi32>
    %221 = arith.addi %0, %220 : vector<1x128xi32>
    %c32_i32_66 = arith.constant 32 : i32
    %222 = vector.broadcast %c32_i32_66 : i32 to vector<1x128xi32>
    %223 = arith.cmpi slt, %221, %222 : vector<1x128xi32>
    %224 = arith.andi %219, %223 : vector<1x128xi1>
    %cst_67 = arith.constant 0.000000e+00 : f32
    %225 = vector.shape_cast %224 : vector<1x128xi1> to vector<1x128xi1>
    %226 = vector.broadcast %225 : vector<1x128xi1> to vector<32x128xi1>
    %227 = vector.broadcast %cst_67 : f32 to vector<32x128xf32>
    %228 = arith.select %226, %215, %227 : vector<32x128xi1>, vector<32x128xf32>
    %c3_68 = arith.constant 3 : index
    %c0_69 = arith.constant 0 : index
    %c0_70 = arith.constant 0 : index
    %229 = vector.load %arg7[%c3_68, %c0_69, %c0_70] : memref<5x32x32xf32, #tpu.memory_space<vmem>>, vector<1x32x32xf32>
    %230 = vector.shape_cast %229 : vector<1x32x32xf32> to vector<32x32xf32>
    %cst_71 = arith.constant dense<0.000000e+00> : vector<32x128xf32>
    %231 = tpu.matmul %230, %228, %cst_71 {dimension_numbers = #tpu.dot_dimension_numbers<[1], [0], [0], [1], [0, 0, 1, 1], [], []>} : vector<32x32xf32>, vector<32x128xf32>, vector<32x128xf32> -> vector<32x128xf32>
    %232 = arith.addf %214, %231 : vector<32x128xf32>
    %c126_i32_72 = arith.constant 126 : i32
    %233 = tpu.dynamic_rotate %175 by %c126_i32_72 dim 1 : vector<32x128xf32>, i32 -> vector<32x128xf32>
    %c2_i32_73 = arith.constant 2 : i32
    %234 = vector.broadcast %c2_i32_73 : i32 to vector<1x128xi32>
    %235 = arith.addi %0, %234 : vector<1x128xi32>
    %c0_i32_74 = arith.constant 0 : i32
    %236 = vector.broadcast %c0_i32_74 : i32 to vector<1x128xi32>
    %237 = arith.cmpi sge, %235, %236 : vector<1x128xi32>
    %c2_i32_75 = arith.constant 2 : i32
    %238 = vector.broadcast %c2_i32_75 : i32 to vector<1x128xi32>
    %239 = arith.addi %0, %238 : vector<1x128xi32>
    %c32_i32_76 = arith.constant 32 : i32
    %240 = vector.broadcast %c32_i32_76 : i32 to vector<1x128xi32>
    %241 = arith.cmpi slt, %239, %240 : vector<1x128xi32>
    %242 = arith.andi %237, %241 : vector<1x128xi1>
    %cst_77 = arith.constant 0.000000e+00 : f32
    %243 = vector.shape_cast %242 : vector<1x128xi1> to vector<1x128xi1>
    %244 = vector.broadcast %243 : vector<1x128xi1> to vector<32x128xi1>
    %245 = vector.broadcast %cst_77 : f32 to vector<32x128xf32>
    %246 = arith.select %244, %233, %245 : vector<32x128xi1>, vector<32x128xf32>
    %c4_78 = arith.constant 4 : index
    %c0_79 = arith.constant 0 : index
    %c0_80 = arith.constant 0 : index
    %247 = vector.load %arg7[%c4_78, %c0_79, %c0_80] : memref<5x32x32xf32, #tpu.memory_space<vmem>>, vector<1x32x32xf32>
    %248 = vector.shape_cast %247 : vector<1x32x32xf32> to vector<32x32xf32>
    %cst_81 = arith.constant dense<0.000000e+00> : vector<32x128xf32>
    %249 = tpu.matmul %248, %246, %cst_81 {dimension_numbers = #tpu.dot_dimension_numbers<[1], [0], [0], [1], [0, 0, 1, 1], [], []>} : vector<32x32xf32>, vector<32x128xf32>, vector<32x128xf32> -> vector<32x128xf32>
    %250 = arith.addf %232, %249 : vector<32x128xf32>
    %c0_82 = arith.constant 0 : index
    %c0_83 = arith.constant 0 : index
    %251 = vector.load %arg8[%c0_82, %c0_83] : memref<32x1xf32, #tpu.memory_space<vmem>>, vector<32x1xf32>
    %252 = vector.broadcast %251 : vector<32x1xf32> to vector<32x128xf32>
    %253 = arith.addf %250, %252 : vector<32x128xf32>
    %cst_84 = arith.constant 0.000000e+00 : f32
    %254 = vector.broadcast %cst_84 : f32 to vector<32x128xf32>
    %255 = arith.cmpf ogt, %253, %254 : vector<32x128xf32>
    %cst_85 = arith.constant 0.000000e+00 : f32
    %256 = vector.broadcast %cst_85 : f32 to vector<32x128xf32>
    %257 = arith.minimumf %253, %256 : vector<32x128xf32>
    %258 = math.exp %257 : vector<32x128xf32>
    %cst_86 = arith.constant 1.000000e+00 : f32
    %259 = vector.broadcast %cst_86 : f32 to vector<32x128xf32>
    %260 = arith.subf %258, %259 : vector<32x128xf32>
    %261 = arith.select %255, %253, %260 : vector<32x128xi1>, vector<32x128xf32>
    %c0_87 = arith.constant 0 : index
    %c0_88 = arith.constant 0 : index
    %c0_89 = arith.constant 0 : index
    %262 = vector.load %arg9[%c0_87, %c0_88, %c0_89] : memref<1x1x32xf32, #tpu.memory_space<vmem>>, vector<1x1x32xf32>
    %263 = vector.shape_cast %262 : vector<1x1x32xf32> to vector<1x32xf32>
    %cst_90 = arith.constant dense<0.000000e+00> : vector<1x128xf32>
    %264 = tpu.matmul %263, %261, %cst_90 {dimension_numbers = #tpu.dot_dimension_numbers<[1], [0], [0], [1], [0, 0, 1, 1], [], []>} : vector<1x32xf32>, vector<32x128xf32>, vector<1x128xf32> -> vector<1x128xf32>
    %c0_91 = arith.constant 0 : index
    %c0_92 = arith.constant 0 : index
    %265 = vector.load %arg10[%c0_91, %c0_92] : memref<1x1xf32, #tpu.memory_space<vmem>>, vector<1x1xf32>
    %266 = vector.broadcast %265 : vector<1x1xf32> to vector<1x128xf32>
    %267 = arith.addf %264, %266 : vector<1x128xf32>
    %cst_93 = arith.constant 0.000000e+00 : f32
    %268 = vector.broadcast %cst_93 : f32 to vector<1x128xf32>
    %269 = arith.subf %268, %267 : vector<1x128xf32>
    %270 = math.exp %269 : vector<1x128xf32>
    %cst_94 = arith.constant 1.000000e+00 : f32
    %271 = vector.broadcast %cst_94 : f32 to vector<1x128xf32>
    %272 = arith.addf %271, %270 : vector<1x128xf32>
    %cst_95 = arith.constant 1.000000e+00 : f32
    %273 = vector.broadcast %cst_95 : f32 to vector<1x128xf32>
    %274 = arith.divf %273, %272 : vector<1x128xf32>
    %c0_96 = arith.constant 0 : index
    %c0_97 = arith.constant 0 : index
    %275 = vector.load %arg11[%c0_96, %c0_97] : memref<1x128xf32, #tpu.memory_space<vmem>>, vector<1x128xf32>
    tpu.vector_store %arg11[%c0_96, %c0_97], %274 {strides = array<i32>} : memref<1x128xf32, #tpu.memory_space<vmem>>, vector<1x128xf32>,
    return
  }
  func.func @transform_0(%arg0: i32, %arg1: memref<2xf32, #tpu.memory_space<smem>>) -> (i32, i32) {
    %c0_i32 = arith.constant 0 : i32
    %c0_i32_0 = arith.constant 0 : i32
    return %c0_i32, %arg0 : i32, i32
  }
  func.func @transform_1(%arg0: i32, %arg1: memref<2xf32, #tpu.memory_space<smem>>) -> (i32, i32) {
    %c0_i32 = arith.constant 0 : i32
    %c0_i32_0 = arith.constant 0 : i32
    return %c0_i32, %arg0 : i32, i32
  }
  func.func @transform_2(%arg0: i32, %arg1: memref<2xf32, #tpu.memory_space<smem>>) -> (i32, i32) {
    %c0_i32 = arith.constant 0 : i32
    %c0_i32_0 = arith.constant 0 : i32
    return %c0_i32, %arg0 : i32, i32
  }
  func.func @transform_3(%arg0: i32, %arg1: memref<2xf32, #tpu.memory_space<smem>>) -> (i32, i32, i32) {
    %c0_i32 = arith.constant 0 : i32
    %c0_i32_0 = arith.constant 0 : i32
    %c0_i32_1 = arith.constant 0 : i32
    %c0_i32_2 = arith.constant 0 : i32
    return %c0_i32, %c0_i32_0, %c0_i32_1 : i32, i32, i32
  }
  func.func @transform_4(%arg0: i32, %arg1: memref<2xf32, #tpu.memory_space<smem>>) -> (i32, i32) {
    %c0_i32 = arith.constant 0 : i32
    %c0_i32_0 = arith.constant 0 : i32
    %c0_i32_1 = arith.constant 0 : i32
    return %c0_i32, %c0_i32_0 : i32, i32
  }
  func.func @transform_5(%arg0: i32, %arg1: memref<2xf32, #tpu.memory_space<smem>>) -> (i32, i32, i32) {
    %c0_i32 = arith.constant 0 : i32
    %c0_i32_0 = arith.constant 0 : i32
    %c0_i32_1 = arith.constant 0 : i32
    %c0_i32_2 = arith.constant 0 : i32
    return %c0_i32, %c0_i32_0, %c0_i32_1 : i32, i32, i32
  }
  func.func @transform_6(%arg0: i32, %arg1: memref<2xf32, #tpu.memory_space<smem>>) -> (i32, i32) {
    %c0_i32 = arith.constant 0 : i32
    %c0_i32_0 = arith.constant 0 : i32
    %c0_i32_1 = arith.constant 0 : i32
    return %c0_i32, %c0_i32_0 : i32, i32
  }
  func.func @transform_7(%arg0: i32, %arg1: memref<2xf32, #tpu.memory_space<smem>>) -> (i32, i32, i32) {
    %c0_i32 = arith.constant 0 : i32
    %c0_i32_0 = arith.constant 0 : i32
    %c0_i32_1 = arith.constant 0 : i32
    %c0_i32_2 = arith.constant 0 : i32
    return %c0_i32, %c0_i32_0, %c0_i32_1 : i32, i32, i32
  }
  func.func @transform_8(%arg0: i32, %arg1: memref<2xf32, #tpu.memory_space<smem>>) -> (i32, i32) {
    %c0_i32 = arith.constant 0 : i32
    %c0_i32_0 = arith.constant 0 : i32
    %c0_i32_1 = arith.constant 0 : i32
    return %c0_i32, %c0_i32_0 : i32, i32
  }
  func.func @transform_9(%arg0: i32, %arg1: memref<2xf32, #tpu.memory_space<smem>>) -> (i32, i32) {
    %c0_i32 = arith.constant 0 : i32
    %c0_i32_0 = arith.constant 0 : i32
    return %c0_i32, %arg0 : i32, i32
  }
}

</mosaic_0001>

<bundles_post_ra>
// kernel: tile.9
= control target key start
LH: loop header
LB: loop body
LE: loop exit
PB: predicated region body
PF: predicated region fallthrough
CT: control target
= control target key end

     0   :  { %s7_s6 = smov 3  ;;  %s14_s9 = smov 3  ;;  %vm4_vm0 = vcmask 261120   ;;  %vm11_vm1 = vcmask 1048320   ;;  %vm18_vm2 = vcmask 785920   ;;  %vm25_vm3 = vcmask 523520   ;;  %s76_s0 = inlined_call_operand.vmem [shape: s32[8,32], index: 0, kind: input, shape index: {}]   ;;  %s77_s1 = inlined_call_operand.vmem [shape: s32[1,256], index: 1, kind: output, shape index: {}]  }
   0x1   :  { %v38_v0 = vld [vmem:[%s76_s0 + $0x3] ss:$4 sm:%s7_s6]   ;;  %s45_s10 = smov 96   ;;  %s21_s11 = smov 3  ;;  %v39_v1 = vld [vmem:[%s76_s0 + $0x2] ss:$4 sm:%s14_s9]  }
   0x2   :  { %9 = vrot.lane.b32.xlu0 %v38_v0, %s45_s10  ;;  %v40_v2 = vld [vmem:[%s76_s0 + $0x1] ss:$4 sm:%s21_s11]   ;;  %s2_s16 = smov 3  ;;  %s46_s17 = smov 32  }
   0x3   :  { %23 = vrot.lane.b32.xlu1 %v40_v2, %s46_s17  ;;  %v3_v3 = vld [vmem:[%s76_s0] ss:$4 sm:%s2_s16]   ;;  %s47_s0 = smov 64  }
   0x4   :  { %5 = vst.msk [vmem:[#allocation0] ss:$8 sm:$0x3] %vm4_vm0, %v3_v3  }
   0x6   :  { %16 = vrot.lane.b32.xlu0 %v39_v1, %s47_s0 }
  0x74   :  { %v10_v4 = vpop.permute.xlu0 %9  }
  0x75   :  { %12 = vst.msk [vmem:[#allocation0] ss:$8 sm:$0x3] %vm11_vm1, %v10_v4   ;;  %v24_v5 = vpop.permute.xlu1 %23  }
  0x78   :  { %v17_v6 = vpop.permute.xlu0 %16  }
  0x79   :  { %19 = vst.msk [vmem:[#allocation0] ss:$8 sm:$0x3] %vm18_vm2, %v17_v6  }
  0x7a   :  { %26 = vst.msk [vmem:[#allocation0] ss:$8 sm:$0x3] %vm25_vm3, %v24_v5  }
  0x81   :  { %v30_v7 = vld [vmem:[#allocation0] sm:$0x1]  ;;  %v34_v8 = vld [vmem:[#allocation0 + $0x8] sm:$0x1] }
  0x82   :  { %32 = vst [vmem:[%s77_s1] sm:$0x1] %v30_v7  ;;  %41 = vst [vmem:[%s77_s1 + $0x1] sm:$0x1] %v34_v8 }

// kernel: cvt_cvt_ae_forward.2
= control target key start
LH: loop header
LB: loop body
LE: loop exit
PB: predicated region body
PF: predicated region fallthrough
CT: control target
= control target key end

     0   :  { %s1796_s27 = smov 0   ;;  %s2108_s0 = inlined_call_operand.vmem [shape: f32[1,256], index: 0, kind: input, shape index: {}]   ;;  %s2109_s1 = inlined_call_operand.vmem [shape: s32[1,256], index: 1, kind: input, shape index: {}]   ;;  %s2110_s2 = inlined_call_operand.vmem [shape: f32[5,32,1], index: 2, kind: input, shape index: {}]   ;;  %s2111_s3 = inlined_call_operand.vmem [shape: f32[32,1], index: 3, kind: input, shape index: {}]   ;;  %s2112_s4 = inlined_call_operand.vmem [shape: f32[5,32,32], index: 4, kind: input, shape index: {}]   ;;  %s2113_s5 = inlined_call_operand.vmem [shape: f32[32,1], index: 5, kind: input, shape index: {}]   ;;  %s2114_s6 = inlined_call_operand.vmem [shape: f32[1,3,32], index: 6, kind: input, shape index: {}]   ;;  %s2115_s7 = inlined_call_operand.vmem [shape: f32[3,1], index: 7, kind: input, shape index: {}]   ;;  %s2116_s8 = inlined_call_operand.vmem [shape: f32[3,256], index: 8, kind: output, shape index: {}]  }
   0x1 LB: > { %s1372_s28 = sadd.s32 4294967295, %s1741_s27   ;;  %p1376_p0 = scmp.ge.s32.totalorder %s1741_s27, 1  ;;  %s1741_s27 = sphi %s1796_s27, %s18_s27  }
   0x2   : > { %p268_p1 = scmp.lt.s32.totalorder %s1741_s27, 3 }
   0x4   : > { %p269_p2 = pnand %p1376_p0, %p268_p1 }
   0x5   : > { %v1378_v0 = vld [vmem:[%s2110_s2 + $0x20] sm:$0xff] (!%p269_p2)  ;;  %p302_p3 = scmp.lt.s32.totalorder (!%p269_p2), %s1372_s28, 1  ;;  %v1743_v2 = vmov (!%p269_p2), 0   ;;  %v1379_v3 = vld [vmem:[%s2110_s2 + $0x28] sm:$0xff] (!%p269_p2)  ;;  %v325_v10 = vld [vmem:[%s2110_s2 + $0x10] sm:$0xff] (!%p269_p2)  ;;  %s1744_s24 = smov (!%p269_p2), 2   ;;  %v348_v41 = vlaneseq (!%p269_p2) }
   0x6   : > { %272 = sbr.rel (%p269_p2) target bundleno = 801 (0x321), region = 52  ;;  %v323_v1 = vld [vmem:[%s2110_s2] sm:$0xff] (!%p269_p2)  ;;  %1678 = vset.pattern.permute.xlu1 (!%p269_p2), %v1743_v2  ;;  %1677 = vset.pattern.permute.xlu0 (!%p269_p2), %v1743_v2  ;;  %v324_v4 = vld [vmem:[%s2110_s2 + $0x8] sm:$0xff] (!%p269_p2)  ;;  %v326_v11 = vld [vmem:[%s2110_s2 + $0x18] sm:$0xff] (!%p269_p2)  ;;  %s1745_s29 = smov (!%p269_p2), 1   ;;  %vm631_vm12 = vcmask (!%p269_p2), 261120  }
   0x7   : > { %371 = vperm.xlu1 (!%p269_p2), %1678, %v1378_v0   ;;  %329 = vperm.xlu0 (!%p269_p2), %1677, %v323_v1   ;;  %v1383_v7 = vld [vmem:[%s2110_s2 + $0x48] sm:$0xff] (!%p269_p2)  ;;  %v1382_v8 = vld [vmem:[%s2110_s2 + $0x40] sm:$0xff] (!%p269_p2)  ;;  %v1381_v12 = vld [vmem:[%s2110_s2 + $0x38] sm:$0xff] (!%p269_p2)  ;;  %s1746_s30 = smov (!%p269_p2), 127   ;;  %s1747_s11 = smov (!%p269_p2), 126   ;;  %v349_v44 = vshrl.u32 (!%p269_p2), %v348_v41, 7 }
   0x8   : > { %v1380_v13 = vld [vmem:[%s2110_s2 + $0x30] sm:$0xff] (!%p269_p2)  ;;  %v1387_v14 = vld [vmem:[%s2110_s2 + $0x68] sm:$0xff] (!%p269_p2)  ;;  %v1386_v15 = vld [vmem:[%s2110_s2 + $0x60] sm:$0xff] (!%p269_p2) }
   0x9   : > { %v1385_v16 = vld [vmem:[%s2110_s2 + $0x58] sm:$0xff] (!%p269_p2)  ;;  %v1384_v17 = vld [vmem:[%s2110_s2 + $0x50] sm:$0xff] (!%p269_p2)  ;;  %v1391_v18 = vld [vmem:[%s2110_s2 + $0x88] sm:$0xff] (!%p269_p2)  ;;  %v1908_v51 = vsub.s32 (!%p269_p2), 0, %v349_v44 }
   0xa   : > { %v1390_v19 = vld [vmem:[%s2110_s2 + $0x80] sm:$0xff] (!%p269_p2)  ;;  %v1388_v20 = vld [vmem:[%s2110_s2 + $0x70] sm:$0xff] (!%p269_p2)  ;;  %v1389_v21 = vld [vmem:[%s2110_s2 + $0x78] sm:$0xff] (!%p269_p2) }
   0xb   : > { %376 = vperm.xlu1 (!%p269_p2), %1678, %v1379_v3   ;;  %334 = vperm.xlu0 (!%p269_p2), %1677, %v324_v4   ;;  %v1393_v22 = vld [vmem:[%s2110_s2 + $0x98] sm:$0xff] (!%p269_p2)  ;;  %v1392_v23 = vld [vmem:[%s2110_s2 + $0x90] sm:$0xff] (!%p269_p2)  ;;  %v535_v24 = vld [vmem:[%s2111_s3 + $0x8] sm:$0xff] (!%p269_p2) }
   0xc   : > { %v534_v25 = vld [vmem:[%s2111_s3] sm:$0xff] (!%p269_p2)  ;;  %v537_v26 = vld [vmem:[%s2111_s3 + $0x18] sm:$0xff] (!%p269_p2)  ;;  %v536_v27 = vld [vmem:[%s2111_s3 + $0x10] sm:$0xff] (!%p269_p2) }
   0xd   : > { %s2134_s28 = smov (!%p302_p3, %s1372_s28), 1 }
   0xe   : > { %s304_s17 = scalar_lea.vmem %s2108_s0, %s2134_s28  ;;  %s307_s9 = scalar_lea.vmem %s2109_s1, %s2134_s28 }
   0xf   : > { %v313_v5 = vld [vmem:[%s304_s17] sm:$0x1]  ;;  %415 = vperm.xlu1 %1678, %v1383_v7   ;;  %410 = vperm.xlu0 %1677, %v1382_v8   ;;  %s1377_s21 = sshll.u32 %s2134_s28, 2 }
  0x10   : > { %v314_v6 = vmul.f32 2.0, %v313_v5  ;;  %v312_v36 = vld [vmem:[%s307_s9] sm:$0x1]  ;;  %s311_s25 = scalar_lea.vmem %s2116_s8, %s1377_s21 }
  0x11   : > { %v359_v39 = vadd.s32 4294967295, %v312_v36  ;;  %v318_v40 = vadd.s32 4294967294, %v312_v36  ;;  %v444_v50 = vadd.s32 1, %v312_v36  ;;  %v490_v56 = vadd.s32 2, %v312_v36 }
  0x12   : > { %v1830_v9 = vsub.f32 1.0, %v314_v6 }
  0x13   : > { %339 = vperm.xlu1 %1678, %v325_v10   ;;  %vm360_vm0 = vcmp.ge.s32.totalorder %v359_v39, 0  ;;  %vm361_vm1 = vcmp.lt.s32.totalorder %v359_v39, 32  ;;  %vm319_vm2 = vcmp.ge.s32.totalorder %v318_v40, 0  ;;  %vm320_vm3 = vcmp.lt.s32.totalorder %v318_v40, 32 }
  0x14   : > { %316 = vrot.lane.b32.xlu0 %v1830_v9, %s1744_s24  ;;  %vm1898_vm4 = vmand %vm360_vm0, %vm361_vm1  ;;  %vm445_vm6 = vcmp.ge.s32.totalorder %v444_v50, 0  ;;  %vm446_vm7 = vcmp.lt.s32.totalorder %v444_v50, 32  ;;  %vm491_vm9 = vcmp.ge.s32.totalorder %v490_v56, 0  ;;  %vm492_vm10 = vcmp.lt.s32.totalorder %v490_v56, 32 }
  0x15   : > { %vm1902_vm5 = vmand %vm319_vm2, %vm320_vm3  ;;  %v432_v63 = vrot.slane %v1830_v9, %v1908_v51 }
  0x16   : > { %vm1914_vm8 = vmand %vm445_vm6, %vm446_vm7 }
  0x17   : > { %357 = vrot.lane.b32.xlu1 %v1830_v9, %s1745_s29  ;;  %vm1923_vm11 = vmand %vm491_vm9, %vm492_vm10  ;;  %vm1749_vm9 = vmmov 0  }
  0x18   : > { %344 = vperm.xlu0 %1677, %v326_v11  }
  0x1b   : > { %386 = vperm.xlu1 %1678, %v1381_v12  }
  0x1c   : > { %381 = vperm.xlu0 %1677, %v1380_v13  }
  0x1f   : > { %461 = vperm.xlu1 %1678, %v1387_v14  }
  0x20   : > { %456 = vperm.xlu0 %1677, %v1386_v15  }
  0x23   : > { %425 = vperm.xlu1 %1678, %v1385_v16  }
  0x24   : > { %420 = vperm.xlu0 %1677, %v1384_v17  }
  0x27   : > { %507 = vperm.xlu1 %1678, %v1391_v18  }
  0x28   : > { %502 = vperm.xlu0 %1677, %v1390_v19  }
  0x2b   : > { %466 = vperm.xlu1 %1678, %v1388_v20  }
  0x2c   : > { %442 = vrot.lane.b32.xlu0 %v1830_v9, %s1746_s30 }
  0x2f   : > { %488 = vrot.lane.b32.xlu1 %v1830_v9, %s1747_s11 }
  0x30   : > { %471 = vperm.xlu0 %1677, %v1389_v21  }
  0x33   : > { %517 = vperm.xlu1 %1678, %v1393_v22  }
  0x34   : > { %512 = vperm.xlu0 %1677, %v1392_v23  }
  0x37   : > { %545 = vperm.xlu1 %1678, %v535_v24  }
  0x38   : > { %540 = vperm.xlu0 %1677, %v534_v25  }
  0x3b   : > { %555 = vperm.xlu1 %1678, %v537_v26  }
  0x3c   : > { %550 = vperm.xlu0 %1677, %v536_v27  }
  0x86   : > { %v372_v28 = vpop.permute.xlu1 %371  ;;  %v330_v29 = vpop.permute.xlu0 %329 }
  0x8a   : > { %v377_v30 = vpop.permute.xlu1 %376  ;;  %v335_v31 = vpop.permute.xlu0 %334 }
  0x8e   : > { %v416_v32 = vpop.permute.xlu1 %415  ;;  %v411_v33 = vpop.permute.xlu0 %410 }
  0x8f   : > { %v435_v11 = vmul.f32 %v432_v63, %v416_v32  ;;  %v434_v12 = vmul.f32 %v432_v63, %v411_v33 }
  0x92   : > { %v340_v34 = vpop.permute.xlu1 %339  ;;  %v317_v35 = vpop.permute.xlu0 %316 }
  0x93   : > { %v322_v54 = vsel %vm1902_vm5, %v317_v35, 0.0 }
  0x94   : > { %v351_v57 = vrot.slane %v322_v54, %v1908_v51 }
  0x96   : > { %v358_v37 = vpop.permute.xlu1 %357  ;;  %v353_v0 = vmul.f32 %v351_v57, %v330_v29  ;;  %v354_v1 = vmul.f32 %v351_v57, %v335_v31  ;;  %v355_v23 = vmul.f32 %v351_v57, %v340_v34 }
  0x97   : > { %v345_v38 = vpop.permute.xlu0 %344  ;;  %v363_v49 = vsel %vm1898_vm4, %v358_v37, 0.0 }
  0x98   : > { %v393_v55 = vrot.slane %v363_v49, %v1908_v51  ;;  %v356_v22 = vmul.f32 %v351_v57, %v345_v38 }
  0x9a   : > { %v387_v42 = vpop.permute.xlu1 %386  ;;  %v395_v60 = vmul.f32 %v393_v55, %v372_v28  ;;  %v396_v61 = vmul.f32 %v393_v55, %v377_v30 }
  0x9b   : > { %v382_v43 = vpop.permute.xlu0 %381  ;;  %v398_v16 = vmul.f32 %v393_v55, %v387_v42 }
  0x9c   : > { %v400_v8 = vadd.f32 %v396_v61, %v354_v1  ;;  %v399_v10 = vadd.f32 %v395_v60, %v353_v0  ;;  %v397_v17 = vmul.f32 %v393_v55, %v382_v43 }
  0x9d   : > { %v402_v32 = vadd.f32 %v398_v16, %v356_v22  ;;  %v1419_v22 = vld [vmem:[%s2112_s4 + $0x48] sm:$0xff] }
  0x9e   : > { %v462_v46 = vpop.permute.xlu1 %461  ;;  %v439_v20 = vadd.f32 %v435_v11, %v400_v8  ;;  %v438_v21 = vadd.f32 %v434_v12, %v399_v10  ;;  %v401_v33 = vadd.f32 %v397_v17, %v355_v23  ;;  %v1420_v23 = vld [vmem:[%s2112_s4 + $0x50] sm:$0xff] }
  0x9f   : > { %v457_v47 = vpop.permute.xlu0 %456 }
  0xa2   : > { %v426_v52 = vpop.permute.xlu1 %425 }
  0xa3   : > { %v421_v53 = vpop.permute.xlu0 %420  ;;  %v437_v24 = vmul.f32 %v432_v63, %v426_v52 }
  0xa4   : > { %v436_v25 = vmul.f32 %v432_v63, %v421_v53 }
  0xa5   : > { %v441_v40 = vadd.f32 %v437_v24, %v402_v32  ;;  %v1421_v24 = vld [vmem:[%s2112_s4 + $0x58] sm:$0xff]  ;;  %v940_v32 = vsel %vm1914_vm8, 1, %v1743_v2 }
  0xa6   : > { %v508_v58 = vpop.permute.xlu1 %507  ;;  %v440_v41 = vadd.f32 %v436_v25, %v401_v33  ;;  %v1426_v25 = vld [vmem:[%s2112_s4 + $0x60] sm:$0xff] }
  0xa7   : > { %v503_v59 = vpop.permute.xlu0 %502 }
  0xaa   : > { %v467_v3 = vpop.permute.xlu1 %466 }
  0xab   : > { %v443_v4 = vpop.permute.xlu0 %442 }
  0xac   : > { %v448_v5 = vsel %vm1914_vm8, %v443_v4, 0.0 }
  0xad   : > { %v478_v6 = vrot.slane %v448_v5, %v1908_v51 }
  0xae   : > { %v489_v13 = vpop.permute.xlu1 %488 }
  0xaf   : > { %v472_v14 = vpop.permute.xlu0 %471  ;;  %v481_v9 = vmul.f32 %v478_v6, %v462_v46  ;;  %v480_v15 = vmul.f32 %v478_v6, %v457_v47  ;;  %v494_v18 = vsel %vm1923_vm11, %v489_v13, 0.0  ;;  %v482_v36 = vmul.f32 %v478_v6, %v467_v3  ;;  %v1418_v3 = vld [vmem:[%s2112_s4 + $0x40] sm:$0xff] }
  0xb0   : > { %v524_v19 = vrot.slane %v494_v18, %v1908_v51  ;;  %v483_v35 = vmul.f32 %v478_v6, %v472_v14  ;;  %1538 = vmatprep.mubr.msk.f32.mxu0 %vm631_vm12, %v1418_v3  ;;  %v1398_v13 = vld [vmem:[%s2112_s4 + $0x20] sm:$0xff] }
  0xb1   : > { %v485_v29 = vadd.f32 %v481_v9, %v439_v20  ;;  %v484_v31 = vadd.f32 %v480_v15, %v438_v21  ;;  %v486_v49 = vadd.f32 %v482_v36, %v440_v41  ;;  %1510 = vmatprep.mubr.msk.f32.mxu1 %vm631_vm12, %v1398_v13  ;;  %v594_v36 = vsel %vm1902_vm5, 1, %v1743_v2  ;;  %v1428_v13 = vld [vmem:[%s2112_s4 + $0x70] sm:$0xff] }
  0xb2   : > { %v518_v26 = vpop.permute.xlu1 %517  ;;  %v527_v28 = vmul.f32 %v524_v19, %v508_v58  ;;  %v526_v30 = vmul.f32 %v524_v19, %v503_v59  ;;  %v487_v44 = vadd.f32 %v483_v35, %v441_v40  ;;  %v944_v35 = vrot.slane %v940_v32, %v1908_v51 }
  0xb3   : > { %v513_v27 = vpop.permute.xlu0 %512  ;;  %v529_v42 = vmul.f32 %v524_v19, %v518_v26  ;;  %v1181_v26 = vld [vmem:[%s2113_s5 + $0x8] sm:$0xff]  ;;  %v598_v48 = vrot.slane %v594_v36, %v1908_v51 }
  0xb4   : > { %v531_v37 = vadd.f32 %v527_v28, %v485_v29  ;;  %v530_v39 = vadd.f32 %v526_v30, %v484_v31  ;;  %v528_v43 = vmul.f32 %v524_v19, %v513_v27  ;;  %v1180_v27 = vld [vmem:[%s2113_s5] sm:$0xff]  ;;  %v1183_v28 = vld [vmem:[%s2113_s5 + $0x18] sm:$0xff]  ;;  %v1182_v29 = vld [vmem:[%s2113_s5 + $0x10] sm:$0xff]  ;;  %v616_v31 = vsel %vm1898_vm4, 1, %v1743_v2 }
  0xb5   : > { %v533_v53 = vadd.f32 %v529_v42, %v487_v44  ;;  %v1233_v30 = vld [vmem:[%s2115_s7] sm:$0x7]  ;;  %v620_v33 = vrot.slane %v616_v31, %v1908_v51  ;;  %vm945_vm2 = vcmp.eq.s32.totalorder %v944_v35, 1  ;;  %vm599_vm5 = vcmp.eq.s32.totalorder %v598_v48, 1 }
  0xb6   : > { %v546_v38 = vpop.permute.xlu1 %545  ;;  %v532_v54 = vadd.f32 %v528_v43, %v486_v49  ;;  %vm1995_vm4 = vmpackc.low %vm945_vm2, %vm945_vm2 }
  0xb7   : > { %v541_v34 = vpop.permute.xlu0 %540  ;;  %v559_v46 = vadd.f32 %v546_v38, %v531_v37  ;;  %vm621_vm1 = vcmp.eq.s32.totalorder %v620_v33, 1  ;;  %v1064_v37 = vsel %vm1923_vm11, 1, %v1743_v2  ;;  %vm2020_vm7 = vmpackc.low %vm599_vm5, %vm599_vm5 }
  0xb8   : > { %v558_v47 = vadd.f32 %v541_v34, %v530_v39  ;;  %vm1991_vm3 = vmpackc.low %vm621_vm1, %vm621_vm1  ;;  %v1068_v2 = vrot.slane %v1064_v37, %v1908_v51 }
  0xb9   : > { %v567_v50 = vmin.f32 %v559_v46, 0.0  ;;  %vm563_vm13 = vcmp.gt.f32.partialorder %v559_v46, 0.0 }
  0xba   : > { %v566_v52 = vmin.f32 %v558_v47, 0.0  ;;  %v556_v55 = vpop.permute.xlu1 %555  ;;  %vm562_vm14 = vcmp.gt.f32.partialorder %v558_v47, 0.0  ;;  %vm1069_vm6 = vcmp.eq.s32.totalorder %v1068_v2, 1 }
  0xbb   : > { %v551_v56 = vpop.permute.xlu0 %550  ;;  %v572_v57 = vmul.f32 1.442695, %v567_v50  ;;  %v561_v59 = vadd.f32 %v556_v55, %v533_v53  ;;  %vm2027_vm8 = vmpackc.low %vm1069_vm6, %vm1069_vm6 }
  0xbc   : > { %v570_v58 = vmul.f32 1.442695, %v566_v52  ;;  %v560_v60 = vadd.f32 %v551_v56, %v532_v54 }
  0xbd   : > { %1719 = vpow2.f32 %v572_v57  ;;  %v569_v61 = vmin.f32 %v561_v59, 0.0  ;;  %vm565_vm15 = vcmp.gt.f32.partialorder %v561_v59, 0.0 }
  0xbe   : > { %1721 = vpow2.f32 %v570_v58  ;;  %v568_v63 = vmin.f32 %v560_v60, 0.0  ;;  %vm564_vm0 = vcmp.gt.f32.partialorder %v560_v60, 0.0 }
  0xbf   : > { %v576_v0 = vmul.f32 1.442695, %v569_v61 }
  0xc0   : > { %v574_v1 = vmul.f32 1.442695, %v568_v63 }
  0xc1   : > { %1723 = vpow2.f32 %v576_v0 }
  0xc2   : > { %1725 = vpow2.f32 %v574_v1  ;;  %v1427_v1 = vld [vmem:[%s2112_s4 + $0x68] sm:$0xff] }
  0xc7   : > { %v1720_v4 = vpop.eup %1719 }
  0xc8   : > { %v1722_v5 = vpop.eup %1721  ;;  %v1395_v6 = vadd.f32 -1.0, %v1720_v4 }
  0xc9   : > { %v1394_v8 = vadd.f32 -1.0, %v1722_v5 }
  0xca   : > { %v583_v10 = vsel %vm563_vm13, %v559_v46, %v1395_v6 }
  0xcb   : > { %v1724_v11 = vpop.eup %1723  ;;  %v582_v12 = vsel %vm562_vm14, %v558_v47, %v1394_v8 }
  0xcc   : > { %v1726_v14 = vpop.eup %1725  ;;  %v1397_v9 = vadd.f32 -1.0, %v1724_v11  ;;  %v1684_v15 = vpack.i.bf16 %v583_v10, %v582_v12  ;;  %v1607_v16 = vpack.c.bf16 %v583_v10, %v582_v12  ;;  %v1400_v12 = vld [vmem:[%s2112_s4 + $0x30] sm:$0xff] }
  0xcd   : > { %v1396_v17 = vadd.f32 -1.0, %v1726_v14  ;;  %v1401_v14 = vld [vmem:[%s2112_s4 + $0x38] sm:$0xff] }
  0xce   : > { %v585_v18 = vsel %vm565_vm15, %v561_v59, %v1397_v9  ;;  %1685 = vrot.lane.b32.xlu1 %v1684_v15, %s1746_s30  ;;  %1680 = vrot.lane.b32.xlu0 %v1684_v15, %s1745_s29 }
  0xcf   : > { %v584_v19 = vsel %vm564_vm0, %v560_v60, %v1396_v17  ;;  %1608 = vmatprep.subr.bf16.mxu0 %v1607_v16  ;;  %v1399_v60 = vld [vmem:[%s2112_s4 + $0x28] sm:$0xff]  ;;  %v604_v17 = vld [vmem:[%s2112_s4] sm:$0xff] }
  0xd0   : > { %1610 = vmatpush3.bf16.msra.mxu0 %v1607_v16  ;;  %v1694_v20 = vpack.i.bf16 %v585_v18, %v584_v19  ;;  %v1611_v21 = vpack.c.bf16 %v585_v18, %v584_v19  ;;  %v1429_v16 = vld [vmem:[%s2112_s4 + $0x78] sm:$0xff]  ;;  %v1438_v18 = vld [vmem:[%s2112_s4 + $0x80] sm:$0xff]  ;;  %v605_v19 = vld [vmem:[%s2112_s4 + $0x8] sm:$0xff] }
  0xd2   : > { %1695 = vrot.lane.b32.xlu1 %v1694_v20, %s1746_s30  ;;  %1690 = vrot.lane.b32.xlu0 %v1694_v20, %s1745_s29 }
  0xd3   : > { %1612 = vmatprep.subr.bf16.mxu0 %v1611_v21 }
  0xd4   : > { %1614 = vmatpush3.bf16.msra.mxu0 %v1611_v21  ;;  %v606_v21 = vld [vmem:[%s2112_s4 + $0x10] sm:$0xff] }
  0xd6   : > { %1705 = vrot.lane.b32.xlu1 %v1684_v15, %s1747_s11  ;;  %1700 = vrot.lane.b32.xlu0 %v1684_v15, %s1744_s24 }
  0xd7   : > { %1539 = vmatmul.mubr.msk.f32.vlgmr.msra.gmra.mrb[0].mxu0 %vm631_vm12, %v1419_v22  ;;  %v1440_v22 = vld [vmem:[%s2112_s4 + $0x90] sm:$0xff] }
  0xd8   : > { %1541 = vmatprep.mubr.msk.f32.mxu0 %vm631_vm12, %v1420_v23  ;;  %v607_v23 = vld [vmem:[%s2112_s4 + $0x18] sm:$0xff] }
  0xda   : > { %1715 = vrot.lane.b32.xlu1 %v1694_v20, %s1747_s11  ;;  %1710 = vrot.lane.b32.xlu0 %v1694_v20, %s1744_s24  ;;  %v1439_v20 = vld [vmem:[%s2112_s4 + $0x88] sm:$0xff] }
  0xdb   : > { %1542 = vmatmul.mubr.msk.f32.gmra.mrb[2].mxu0 %vm631_vm12, %v1421_v24  ;;  %v1441_v24 = vld [vmem:[%s2112_s4 + $0x98] sm:$0xff] }
  0xdc   : > { %1552 = vmatprep.mubr.msk.f32.mxu0 %vm631_vm12, %v1426_v25  ;;  %v1748_v25 = vmov 0.0|0.0  }
  0xde   : > { %1191 = vperm.xlu1 %1678, %v1181_v26   ;;  %1186 = vperm.xlu0 %1677, %v1180_v27   ;;  %v1750_v26 = vmov 0.0  }
  0xe2   : > { %1201 = vperm.xlu1 %1678, %v1183_v28   ;;  %1196 = vperm.xlu0 %1677, %v1182_v29  }
  0xe6   : > { %1236 = vperm.xlu0 %1677, %v1233_v30  }
 0x140   : > { %v1686_v45 = vpop.permute.xlu1 %1685  ;;  %v1681_v39 = vpop.permute.xlu0 %1680 }
 0x141   : > { %v1688_v40 = vunpack.i.h.bf16 %v1686_v45  ;;  %v1687_v41 = vunpack.i.l.bf16 %v1686_v45  ;;  %v1683_v62 = vunpack.i.h.bf16 %v1681_v39  ;;  %v1682_v42 = vunpack.i.l.bf16 %v1681_v39 }
 0x143   : > { %v1615_v34 = vpack.c.bf16 %v1688_v40, %v1687_v41  ;;  %v1583_v44 = vpack.c.bf16 %v1683_v62, %v1682_v42 }
 0x144   : > { %v1696_v7 = vpop.permute.xlu1 %1695  ;;  %v1691_v46 = vpop.permute.xlu0 %1690 }
 0x145   : > { %v1698_v47 = vunpack.i.h.bf16 %v1696_v7  ;;  %v1697_v49 = vunpack.i.l.bf16 %v1696_v7  ;;  %v1693_v50 = vunpack.i.h.bf16 %v1691_v46  ;;  %v1692_v52 = vunpack.i.l.bf16 %v1691_v46  ;;  %1585 = vmatprep.subr.msk.bf16.mxu1 %vm1991_vm3, %v1583_v44  ;;  %1617 = vmatprep.subr.msk.bf16.mxu0 %vm1995_vm4, %v1615_v34 }
 0x146   : > { %1588 = vmatpush3.bf16.msk.msra.mxu1 %vm1991_vm3, %v1583_v44  ;;  %1620 = vmatpush3.bf16.msk.msra.mxu0 %vm1995_vm4, %v1615_v34 }
 0x147   : > { %v1621_v53 = vpack.c.bf16 %v1698_v47, %v1697_v49  ;;  %v1589_v51 = vpack.c.bf16 %v1693_v50, %v1692_v52 }
 0x148   : > { %v1706_v54 = vpop.permute.xlu1 %1705  ;;  %v1701_v55 = vpop.permute.xlu0 %1700 }
 0x149   : > { %v1708_v56 = vunpack.i.h.bf16 %v1706_v54  ;;  %v1707_v57 = vunpack.i.l.bf16 %v1706_v54  ;;  %v1703_v58 = vunpack.i.h.bf16 %v1701_v55  ;;  %v1702_v59 = vunpack.i.l.bf16 %v1701_v55  ;;  %1591 = vmatprep.subr.msk.bf16.mxu1 %vm1991_vm3, %v1589_v51  ;;  %1623 = vmatprep.subr.msk.bf16.mxu0 %vm1995_vm4, %v1621_v53 }
 0x14a   : > { %1594 = vmatpush3.bf16.msk.msra.mxu1 %vm1991_vm3, %v1589_v51  ;;  %1626 = vmatpush3.bf16.msk.msra.mxu0 %vm1995_vm4, %v1621_v53 }
 0x14b   : > { %v1627_v63 = vpack.c.bf16 %v1708_v56, %v1707_v57  ;;  %v1595_v0 = vpack.c.bf16 %v1703_v58, %v1702_v59 }
 0x14c   : > { %v1716_v4 = vpop.permute.xlu1 %1715  ;;  %v1711_v5 = vpop.permute.xlu0 %1710 }
 0x14d   : > { %v1718_v6 = vunpack.i.h.bf16 %v1716_v4  ;;  %v1717_v8 = vunpack.i.l.bf16 %v1716_v4  ;;  %v1713_v10 = vunpack.i.h.bf16 %v1711_v5  ;;  %v1712_v11 = vunpack.i.l.bf16 %v1711_v5  ;;  %1511 = vmatmul.mubr.msk.f32.vlgmr.msra.gmra.mrb[0].mxu1 %vm631_vm12, %v1399_v60  ;;  %1597 = vmatprep.subr.msk.bf16.mxu1 %vm2020_vm7, %v1595_v0  ;;  %v1232_v4 = vld [vmem:[%s2114_s6] sm:$0x7] }
 0x14e   : > { %1553 = vmatmul.mubr.msk.f32.vlgmr.msra.gmra.mrb[0].mxu0 %vm631_vm12, %v1427_v1  ;;  %1629 = vmatprep.subr.msk.bf16.mxu0 %vm2027_vm8, %v1627_v63 }
 0x14f   : > { %v1633_v9 = vpack.c.bf16 %v1718_v6, %v1717_v8  ;;  %v1601_v15 = vpack.c.bf16 %v1713_v10, %v1712_v11  ;;  %1600 = vmatpush3.bf16.msk.msra.mxu1 %vm2020_vm7, %v1595_v0  ;;  %1632 = vmatpush3.bf16.msk.msra.mxu0 %vm2027_vm8, %v1627_v63 }
 0x150   : > { %1513 = vmatprep.mubr.msk.f32.mxu1 %vm631_vm12, %v1400_v12  ;;  %1555 = vmatprep.mubr.msk.f32.mxu0 %vm631_vm12, %v1428_v13 }
 0x151   : > { %1514 = vmatmul.mubr.msk.f32.gmra.mrb[2].mxu1 %vm631_vm12, %v1401_v14  ;;  %1603 = vmatprep.subr.msk.bf16.mxu1 %vm2020_vm7, %v1601_v15 }
 0x152   : > { %1556 = vmatmul.mubr.msk.f32.gmra.mrb[2].mxu0 %vm631_vm12, %v1429_v16  ;;  %1635 = vmatprep.subr.msk.bf16.mxu0 %vm2027_vm8, %v1633_v9 }
 0x153   : > { %1606 = vmatpush3.bf16.msk.msra.mxu1 %vm2020_vm7, %v1601_v15  ;;  %1638 = vmatpush3.bf16.msk.msra.mxu0 %vm2027_vm8, %v1633_v9 }
 0x154   : > { %1524 = vmatprep.mubr.msk.f32.mxu1 %vm631_vm12, %v604_v17  ;;  %1566 = vmatprep.mubr.msk.f32.mxu0 %vm631_vm12, %v1438_v18 }
 0x155   : > { %1639 = vmatprep.subr.bf16.mxu1 %v1748_v25 }
 0x156   : > { %1525 = vmatmul.mubr.msk.f32.vlgmr.msra.gmra.mrb[0].mxu1 %vm631_vm12, %v605_v19  ;;  %1567 = vmatmul.mubr.msk.f32.vlgmr.msra.gmra.mrb[0].mxu0 %vm631_vm12, %v1439_v20 }
 0x157   : > { %1527 = vmatprep.mubr.msk.f32.mxu1 %vm631_vm12, %v606_v21  ;;  %1569 = vmatprep.mubr.msk.f32.mxu0 %vm631_vm12, %v1440_v22 }
 0x15a   : > { %1528 = vmatmul.mubr.msk.f32.gmra.mrb[2].mxu1 %vm631_vm12, %v607_v23  ;;  %1570 = vmatmul.mubr.msk.f32.gmra.mrb[2].mxu0 %vm631_vm12, %v1441_v24 }
 0x15b   : > { %1580 = vmatprep.mubr.msk.f32.mxu1 %vm1749_vm9, %v1750_v26 }
 0x15d   : > { %v1192_v27 = vpop.permute.xlu1 %1191  ;;  %v1187_v28 = vpop.permute.xlu0 %1186 }
 0x161   : > { %v1202_v43 = vpop.permute.xlu1 %1201  ;;  %v1197_v34 = vpop.permute.xlu0 %1196 }
 0x165   : > { %v1237_v5 = vpop.permute.xlu0 %1236 }
 0x229   : > { %v1526_v29 = vpop.f32.mrb[0].mxu1  ;;  %v1568_v30 = vpop.f32.mrb[0].mxu0 }
 0x22a   : > { %v1645_v31 = vadd.f32 %v1568_v30, %v1526_v29  ;;  %v807_v32 = vpop.f32.mrb[1].mxu1  ;;  %v1157_v33 = vpop.f32.mrb[1].mxu0 }
 0x22b   : > { %v1646_v35 = vadd.f32 %v1157_v33, %v807_v32 }
 0x22c   : > { %v1205_v36 = vadd.f32 %v1645_v31, %v1192_v27 }
 0x22d   : > { %v1204_v37 = vadd.f32 %v1646_v35, %v1187_v28  ;;  %v1529_v45 = vpop.f32.mrb[2].mxu1  ;;  %v1571_v39 = vpop.f32.mrb[2].mxu0 }
 0x22e   : > { %v1213_v40 = vmin.f32 %v1205_v36, 0.0  ;;  %v1647_v41 = vadd.f32 %v1571_v39, %v1529_v45  ;;  %v817_v62 = vpop.f32.mrb[3].mxu1  ;;  %v1167_v42 = vpop.f32.mrb[3].mxu0  ;;  %vm1209_vm10 = vcmp.gt.f32.partialorder %v1205_v36, 0.0 }
 0x22f   : > { %v1212_v38 = vmin.f32 %v1204_v37, 0.0  ;;  %v1648_v48 = vadd.f32 %v1167_v42, %v817_v62  ;;  %vm1208_vm11 = vcmp.gt.f32.partialorder %v1204_v37, 0.0 }
 0x230   : > { %v1218_v44 = vmul.f32 1.442695, %v1213_v40  ;;  %v1207_v2 = vadd.f32 %v1647_v41, %v1202_v43 }
 0x231   : > { %v1216_v7 = vmul.f32 1.442695, %v1212_v38  ;;  %v1206_v46 = vadd.f32 %v1648_v48, %v1197_v34 }
 0x232   : > { %1727 = vpow2.f32 %v1218_v44  ;;  %v1215_v47 = vmin.f32 %v1207_v2, 0.0  ;;  %vm1211_vm13 = vcmp.gt.f32.partialorder %v1207_v2, 0.0 }
 0x233   : > { %1729 = vpow2.f32 %v1216_v7  ;;  %v1214_v49 = vmin.f32 %v1206_v46, 0.0  ;;  %vm1210_vm14 = vcmp.gt.f32.partialorder %v1206_v46, 0.0 }
 0x234   : > { %v1222_v50 = vmul.f32 1.442695, %v1215_v47 }
 0x235   : > { %v1220_v52 = vmul.f32 1.442695, %v1214_v49 }
 0x236   : > { %1731 = vpow2.f32 %v1222_v50 }
 0x237   : > { %1733 = vpow2.f32 %v1220_v52 }
 0x23c   : > { %v1728_v53 = vpop.eup %1727 }
 0x23d   : > { %v1730_v51 = vpop.eup %1729  ;;  %v1451_v54 = vadd.f32 -1.0, %v1728_v53 }
 0x23e   : > { %v1450_v55 = vadd.f32 -1.0, %v1730_v51 }
 0x23f   : > { %v1229_v56 = vsel %vm1209_vm10, %v1205_v36, %v1451_v54 }
 0x240   : > { %v1732_v57 = vpop.eup %1731  ;;  %v1228_v58 = vsel %vm1208_vm11, %v1204_v37, %v1450_v55 }
 0x241   : > { %v1734_v59 = vpop.eup %1733  ;;  %v1453_v60 = vadd.f32 -1.0, %v1732_v57  ;;  %v1640_v61 = vpack.c.bf16 %v1229_v56, %v1228_v58 }
 0x242   : > { %v1452_v63 = vadd.f32 -1.0, %v1734_v59 }
 0x243   : > { %v1231_v0 = vsel %vm1211_vm13, %v1207_v2, %v1453_v60  ;;  %1641 = vmatpush3.bf16.msra.mxu1 %v1640_v61 }
 0x244   : > { %v1230_v1 = vsel %vm1210_vm14, %v1206_v46, %v1452_v63  ;;  %1642 = vmatprep.subr.bf16.mxu1 %v1748_v25 }
 0x245   : > { %v1643_v3 = vpack.c.bf16 %v1231_v0, %v1230_v1 }
 0x247   : > { %1644 = vmatpush3.bf16.msra.mxu1 %v1643_v3 }
 0x24a   : > { %1581 = vmatmul.mubr.msk.f32.vlgmr.msra.gmra.mrb[4].mxu1 %vm631_vm12, %v1232_v4 }
 0x31d   : > { %v1308_v6 = vpop.f32.mrb[4].mxu1 }
 0x31e   : > { %v1309_v8 = vadd.f32 %v1308_v6, %v1237_v5  ;;  %v1582_v10 = vpop.f32.mrb[5].mxu1 }
 0x320   : > { %1312 = vst [vmem:[%s311_s25] sm:$0x7] %v1309_v8 }
 0x321 PF: > { %s18_s27 = sadd.s32 1, %s1741_s27  }
 0x322   : > { %p15_p4 = scmp.ge.s32.totalorder %s18_s27, 4  }
 0x324   :  { %17 = sbr.rel (!%p15_p4) target bundleno = 1 (0x1), region = 93 }

// kernel: cvt_cvt_ae_forward.3
= control target key start
LH: loop header
LB: loop body
LE: loop exit
PB: predicated region body
PF: predicated region fallthrough
CT: control target
= control target key end

     0   :  { %s2721_s0 = inlined_call_operand.vmem [shape: f32[2], index: 0, kind: input, shape index: {}]   ;;  %s2722_s1 = inlined_call_operand.vmem [shape: f32[3,256], index: 1, kind: input, shape index: {}]   ;;  %s2723_s2 = inlined_call_operand.vmem [shape: f32[3,256], index: 2, kind: input, shape index: {}]   ;;  %s2724_s3 = inlined_call_operand.vmem [shape: s32[1,256], index: 3, kind: input, shape index: {}]   ;;  %s2725_s4 = inlined_call_operand.vmem [shape: f32[5,32,3], index: 4, kind: input, shape index: {}]   ;;  %s2726_s5 = inlined_call_operand.vmem [shape: f32[32,1], index: 5, kind: input, shape index: {}]   ;;  %s2727_s6 = inlined_call_operand.vmem [shape: f32[5,32,32], index: 6, kind: input, shape index: {}]   ;;  %s2728_s7 = inlined_call_operand.vmem [shape: f32[32,1], index: 7, kind: input, shape index: {}]   ;;  %s2729_s8 = inlined_call_operand.vmem [shape: f32[1,1,32], index: 8, kind: input, shape index: {}]   ;;  %s2730_s10 = inlined_call_operand.vmem [shape: f32[1,256], index: 10, kind: output, shape index: {}]   ;;  %s2731_s9 = inlined_call_operand.<no memory space> [shape: f32[1,1], index: 9, kind: input, shape index: {}]  }
   0x1   :  { %s15_s15 = sshll.u32 %s2721_s0, 4  ;;  %v19_v0 = vstv %s2731_s9  ;;  %s16_s15 = int_to_ptr.vmem [resolvable:$true] %s15_s15 }
   0x2   :  { %20 = vst [vmem:[#allocation4] sm:$0x1] %v19_v0  ;;  %s2121_s18 = scalar_lea.vmem %s16_s15, 16  ;;  %p2126_p1 = scmp.lt.s32.totalorder %s16_s15, %s16_s15 }
   0x3   :  { %p2122_p0 = scmp.ne.s32.totalorder %s16_s15, %s2121_s18  ;;  %p2127_p2 = scmp.lt.s32.totalorder %s2121_s18, %s2121_s18 }
   0x5   :  { %p2128_p3 = por %p2127_p2, %p2126_p1 }
   0x7   :  { %p2129_p4 = pnand %p2128_p3, %p2122_p0 }
   0x9   :  { %2132 = shalt.err (!%p2129_p4)  }
   0xa   :  { %s2143_s19 = smov [#allocation3]  }
   0xb   :  { %18 = dma.vmem_to_smem %s16_s15, 16, %s2143_s19, [#allocation2] }
   0xc   :  { %2137 = dma.done.wait [#allocation2], 16 }
   0xd   :  { %2138 = vsyncadd [#allocation2], 4294967280 }
   0xe   :  { %22 = sfence }
   0xf   :  { %s2215_s20 = smov 0  }
  0x10 LB: > { %s1721_s0 = sadd.s32 4294967295, %s2141_s20   ;;  %p1725_p5 = scmp.ge.s32.totalorder %s2141_s20, 1  ;;  %s2141_s20 = sphi %s2215_s20, %s28_s20  }
  0x11   : > { %p312_p6 = scmp.lt.s32.totalorder %s2141_s20, 3 }
  0x13   : > { %p313_p7 = pnand %p1725_p5, %p312_p6 }
  0x14   : > { %v2226_v1 = vld [vmem:[%s2725_s4] sm:$0xff] (!%p313_p7)  ;;  %v2231_v2 = vld [vmem:[%s2725_s4 + $0x8] sm:$0xff] (!%p313_p7)  ;;  %v2144_v3 = vmov (!%p313_p7), 1   ;;  %v2145_v4 = vmov (!%p313_p7), 2   ;;  %p352_p8 = scmp.lt.s32.totalorder (!%p313_p7), %s1721_s0, 1  ;;  %s367_s24 = sld [smem:[#allocation3]] (!%p313_p7)  ;;  %v383_v34 = vlaneseq (!%p313_p7) }
  0x15   : > { %316 = sbr.rel (%p313_p7) target bundleno = 982 (0x3d6), region = 56  ;;  %2031 = vset.pattern.permute.xlu1 (!%p313_p7), %v2144_v3  ;;  %2035 = vset.pattern.permute.xlu0 (!%p313_p7), %v2145_v4  ;;  %s1728_s25 = sld [smem:[#allocation3 + $0x1]] (!%p313_p7)  ;;  %v1730_v7 = vld [vmem:[%s2725_s4 + $0x28] sm:$0xff] (!%p313_p7)  ;;  %v2146_v11 = vmov (!%p313_p7), 0   ;;  %v1731_v14 = vld [vmem:[%s2725_s4 + $0x30] sm:$0xff] (!%p313_p7)  ;;  %v1737_v15 = vld [vmem:[%s2725_s4 + $0x60] sm:$0xff] (!%p313_p7) }
  0x16   : > { %422 = vperm.xlu1 (!%p313_p7), %2031, %v2226_v1   ;;  %454 = vperm.xlu0 (!%p313_p7), %2035, %v2231_v2   ;;  %s2147_s15 = smov (!%p313_p7), 1   ;;  %v1729_v16 = vld [vmem:[%s2725_s4 + $0x20] sm:$0xff] (!%p313_p7)  ;;  %v2270_v17 = vld [vmem:[%s2725_s4 + $0x50] sm:$0xff] (!%p313_p7)  ;;  %v1734_v19 = vld [vmem:[%s2725_s4 + $0x48] sm:$0xff] (!%p313_p7)  ;;  %v384_v36 = vshrl.u32 (!%p313_p7), %v383_v34, 7  ;;  %s2149_s21 = smov (!%p313_p7), 127  }
  0x17   : > { %v2276_v18 = vld [vmem:[%s2725_s4 + $0x70] sm:$0xff] (!%p313_p7)  ;;  %v1733_v20 = vld [vmem:[%s2725_s4 + $0x40] sm:$0xff] (!%p313_p7)  ;;  %v1732_v21 = vld [vmem:[%s2725_s4 + $0x38] sm:$0xff] (!%p313_p7)  ;;  %s2150_s22 = smov (!%p313_p7), 126  }
  0x18   : > { %v1738_v22 = vld [vmem:[%s2725_s4 + $0x68] sm:$0xff] (!%p313_p7)  ;;  %v391_v23 = vld [vmem:[%s2725_s4 + $0x10] sm:$0xff] (!%p313_p7)  ;;  %v2303_v24 = vld [vmem:[%s2725_s4 + $0x78] sm:$0xff] (!%p313_p7)  ;;  %v2363_v37 = vsub.s32 (!%p313_p7), 0, %v384_v36  ;;  %v2383_v47 = vsub.s32 (!%p313_p7), 1, %v384_v36  ;;  %v2386_v50 = vsub.s32 (!%p313_p7), 2, %v384_v36 }
  0x19   : > { %v2310_v25 = vld [vmem:[%s2725_s4 + $0x98] sm:$0xff] (!%p313_p7)  ;;  %v2331_v28 = vld [vmem:[%s2725_s4 + $0x88] sm:$0xff] (!%p313_p7)  ;;  %v2338_v29 = vld [vmem:[%s2725_s4 + $0x90] sm:$0xff] (!%p313_p7) }
  0x1a   : > { %426 = vperm.xlu1 (!%p313_p7), %2031, %v2231_v2   ;;  %v370_v6 = vstv (!%p313_p7), %s367_s24  ;;  %v392_v26 = vld [vmem:[%s2725_s4 + $0x18] sm:$0xff] (!%p313_p7)  ;;  %v888_v30 = vld [vmem:[%s2726_s5] sm:$0xff] (!%p313_p7)  ;;  %v889_v36 = vld [vmem:[%s2726_s5 + $0x8] sm:$0xff] (!%p313_p7) }
  0x1b   : > { %v372_v9 = vstv (!%p313_p7), %s1728_s25  ;;  %v1736_v27 = vld [vmem:[%s2725_s4 + $0x58] sm:$0xff] (!%p313_p7)  ;;  %v1741_v35 = vld [vmem:[%s2725_s4 + $0x80] sm:$0xff] (!%p313_p7) }
  0x1c   : > { %s2749_s0 = smov (!%p352_p8, %s1721_s0), 1  ;;  %v891_v31 = vld [vmem:[%s2726_s5 + $0x18] sm:$0xff] }
  0x1d   : > { %s1726_s26 = sshll.u32 %s2749_s0, 2  ;;  %s362_s18 = scalar_lea.vmem %s2724_s3, %s2749_s0 }
  0x1e   : > { %s355_s29 = scalar_lea.vmem %s2722_s1, %s1726_s26  ;;  %s359_s12 = scalar_lea.vmem %s2723_s2, %s1726_s26  ;;  %2032 = vset.pattern.permute.xlu1 %v2146_v11  ;;  %v2355_v32 = vld [vmem:[%s362_s18] sm:$0x1] }
  0x1f   : > { %v369_v5 = vld [vmem:[%s355_s29] sm:$0x7]  ;;  %502 = vperm.xlu1 %2032, %v1730_v7   ;;  %v479_v33 = vadd.s32 4294967295, %v2355_v32  ;;  %v378_v60 = vadd.s32 4294967294, %v2355_v32  ;;  %s365_s9 = scalar_lea.vmem %s2730_s10, %s2749_s0 }
  0x20   : > { %v371_v8 = vsub.f32 %v369_v5, %v370_v6  ;;  %v374_v10 = vld [vmem:[%s359_s12] sm:$0x7]  ;;  %s2148_s12 = smov 2  }
  0x21   : > { %vm480_vm0 = vcmp.ge.s32.totalorder %v479_v33, 0  ;;  %vm481_vm1 = vcmp.lt.s32.totalorder %v479_v33, 32  ;;  %vm379_vm4 = vcmp.ge.s32.totalorder %v378_v60, 0  ;;  %vm380_vm5 = vcmp.lt.s32.totalorder %v378_v60, 32 }
  0x22   : > { %v373_v12 = vmul.f32 %v372_v9, %v371_v8  ;;  %vm482_vm2 = vmand %vm480_vm0, %vm481_vm1  ;;  %vm973_vm0 = vcmask 261120  }
  0x23   : > { %2033 = vset.pattern.permute.xlu1 %v2144_v3  ;;  %v483_v38 = vsel %vm482_vm2, 1, %v2146_v11  ;;  %vm381_vm6 = vmand %vm379_vm4, %vm380_vm5 }
  0x24   : > { %v2251_v13 = vadd.f32 %v374_v10, %v373_v12  ;;  %528 = vperm.xlu1 %2033, %v1730_v7   ;;  %v487_v39 = vrot.slane %v483_v38, %v2363_v37 }
  0x26   : > { %477 = vrot.lane.b32.xlu0 %v2251_v13, %s2147_s15  ;;  %vm2373_vm3 = vcmp.eq.s32.totalorder %v487_v39, 1 }
  0x28   : > { %2034 = vset.pattern.permute.xlu1 %v2145_v4 }
  0x29   : > { %450 = vperm.xlu1 %2034, %v2226_v1  }
  0x2a   : > { %560 = vperm.xlu0 %2035, %v1731_v14  }
  0x2d   : > { %552 = vperm.xlu1 %2034, %v1729_v16  }
  0x2e   : > { %751 = vperm.xlu0 %2035, %v1737_v15  }
  0x31   : > { %556 = vperm.xlu1 %2034, %v1730_v7   ;;  %v382_v7 = vsel %vm381_vm6, 1, %v2146_v11  ;;  %vm2596_vm6 = vmpackc.low %vm2373_vm3, %vm2373_vm3 }
  0x32   : > { %653 = vperm.xlu0 %2035, %v2270_v17   ;;  %v386_v9 = vrot.slane %v382_v7, %v2363_v37 }
  0x34   : > { %vm2427_vm7 = vcmp.eq.s32.totalorder %v386_v9, 1 }
  0x35   : > { %2036 = vset.pattern.permute.xlu1 %v2146_v11 }
  0x36   : > { %759 = vperm.xlu0 %2035, %v2276_v18   ;;  %595 = vperm.xlu1 %2036, %v1734_v19  }
  0x3a   : > { %2055 = vset.pattern.permute.xlu0 %v2144_v3  ;;  %2037 = vset.pattern.permute.xlu1 %v2144_v3 }
  0x3b   : > { %524 = vperm.xlu0 %2055, %v1729_v16   ;;  %617 = vperm.xlu1 %2037, %v1733_v20  }
  0x3f   : > { %621 = vperm.xlu0 %2055, %v1734_v19   ;;  %376 = vrot.lane.b32.xlu1 %v2251_v13, %s2148_s12 }
  0x40   : > { %2038 = vset.pattern.permute.xlu1 %v2146_v11 }
  0x43   : > { %536 = vperm.xlu0 %2055, %v1732_v21   ;;  %405 = vperm.xlu1 %2038, %v391_v23  }
  0x47   : > { %727 = vperm.xlu0 %2055, %v1738_v22   ;;  %2039 = vset.pattern.permute.xlu1 %v2144_v3 }
  0x48   : > { %430 = vperm.xlu1 %2039, %v391_v23  }
  0x4b   : > { %735 = vperm.xlu0 %2055, %v2303_v24  }
  0x4c   : > { %434 = vperm.xlu1 %2039, %v392_v26  }
  0x4f   : > { %841 = vperm.xlu0 %2055, %v2310_v25  }
  0x50   : > { %2040 = vset.pattern.permute.xlu1 %v2146_v11 }
  0x51   : > { %507 = vperm.xlu1 %2040, %v1731_v14  }
  0x53   : > { %2058 = vset.pattern.permute.xlu0 %v2146_v11 }
  0x54   : > { %395 = vperm.xlu0 %2058, %v2226_v1  }
  0x55   : > { %2041 = vset.pattern.permute.xlu1 %v2144_v3 }
  0x56   : > { %532 = vperm.xlu1 %2041, %v1731_v14  }
  0x58   : > { %400 = vperm.xlu0 %2058, %v2231_v2  }
  0x5a   : > { %2042 = vset.pattern.permute.xlu1 %v2145_v4 }
  0x5b   : > { %645 = vperm.xlu1 %2042, %v1733_v20  }
  0x5c   : > { %497 = vperm.xlu0 %2058, %v1729_v16  }
  0x5f   : > { %649 = vperm.xlu1 %2042, %v1734_v19  }
  0x60   : > { %590 = vperm.xlu0 %2058, %v1733_v20  }
  0x63   : > { %2043 = vset.pattern.permute.xlu1 %v2146_v11 }
  0x64   : > { %410 = vperm.xlu0 %2058, %v392_v26   ;;  %701 = vperm.xlu1 %2043, %v1738_v22  }
  0x68   : > { %512 = vperm.xlu0 %2058, %v1732_v21   ;;  %2044 = vset.pattern.permute.xlu1 %v2144_v3 }
  0x69   : > { %723 = vperm.xlu1 %2044, %v1737_v15  }
  0x6c   : > { %696 = vperm.xlu0 %2058, %v1737_v15  }
  0x6d   : > { %2045 = vset.pattern.permute.xlu1 %v2145_v4 }
  0x6e   : > { %458 = vperm.xlu1 %2045, %v391_v23  }
  0x70   : > { %605 = vperm.xlu0 %2058, %v1736_v27  }
  0x72   : > { %462 = vperm.xlu1 %2045, %v392_v26  }
  0x74   : > { %807 = vperm.xlu0 %2058, %v2331_v28  }
  0x76   : > { %564 = vperm.xlu1 %2045, %v1732_v21  }
  0x78   : > { %706 = vperm.xlu0 %2058, %v2276_v18  }
  0x7a   : > { %2046 = vset.pattern.permute.xlu1 %v2146_v11 }
  0x7b   : > { %600 = vperm.xlu1 %2046, %v2270_v17  }
  0x7c   : > { %812 = vperm.xlu0 %2058, %v2338_v29  }
  0x7f   : > { %2047 = vset.pattern.permute.xlu1 %v2144_v3 }
  0x80   : > { %894 = vperm.xlu0 %2058, %v888_v30   ;;  %625 = vperm.xlu1 %2047, %v2270_v17  }
  0x84   : > { %909 = vperm.xlu0 %2058, %v891_v31   ;;  %629 = vperm.xlu1 %2047, %v1736_v27  }
  0x88   : > { %2048 = vset.pattern.permute.xlu1 %v2145_v4 }
  0x89   : > { %755 = vperm.xlu1 %2048, %v1738_v22  }
  0x8d   : > { %2049 = vset.pattern.permute.xlu1 %v2146_v11 }
  0x8e   : > { %802 = vperm.xlu1 %2049, %v1741_v35  }
  0x92   : > { %2050 = vset.pattern.permute.xlu1 %v2144_v3 }
  0x93   : > { %829 = vperm.xlu1 %2050, %v1741_v35  }
  0x95   : > { %v2368_v40 = vpop.permute.xlu1 %422  ;;  %v2370_v41 = vpop.permute.xlu0 %454 }
  0x97   : > { %833 = vperm.xlu1 %2050, %v2331_v28  }
  0x99   : > { %v427_v43 = vpop.permute.xlu1 %426  ;;  %v478_v44 = vpop.permute.xlu0 %477 }
  0x9a   : > { %v489_v45 = vsel %vm2373_vm3, %v478_v44, 0.0  ;;  %vm2622_vm3 = vmpackc.low %vm2427_vm7, %vm2427_vm7 }
  0x9b   : > { %v2380_v46 = vrot.slane %v489_v45, %v2363_v37  ;;  %2051 = vset.pattern.permute.xlu1 %v2145_v4  ;;  %v2389_v51 = vrot.slane %v489_v45, %v2383_v47  ;;  %v2395_v53 = vrot.slane %v489_v45, %v2386_v50 }
  0x9c   : > { %657 = vperm.xlu1 %2051, %v1736_v27  }
  0x9e   : > { %v503_v48 = vpop.permute.xlu1 %502 }
  0x9f   : > { %v520_v49 = vmul.f32 %v2380_v46, %v503_v48 }
  0xa0   : > { %676 = vrot.lane.b32.xlu1 %v2251_v13, %s2149_s21 }
  0xa1   : > { %2052 = vset.pattern.permute.xlu1 %v2146_v11 }
  0xa3   : > { %v529_v52 = vpop.permute.xlu1 %528 }
  0xa4   : > { %v544_v54 = vmul.f32 %v2389_v51, %v529_v52  ;;  %711 = vperm.xlu1 %2052, %v2303_v24  }
  0xa6   : > { %v548_v56 = vadd.f32 %v544_v54, %v520_v49 }
  0xa8   : > { %v451_v58 = vpop.permute.xlu1 %450  ;;  %2053 = vset.pattern.permute.xlu1 %v2144_v3 }
  0xa9   : > { %v561_v55 = vpop.permute.xlu0 %560  ;;  %731 = vperm.xlu1 %2053, %v2276_v18  }
  0xaa   : > { %v2400_v57 = vmul.f32 %v2395_v53, %v561_v55  ;;  %v2473_v55 = vrot.slane %v2251_v13, %v2383_v47 }
  0xac   : > { %v553_v61 = vpop.permute.xlu1 %552 }
  0xad   : > { %v2403_v59 = vpop.permute.xlu0 %751  ;;  %v2408_v62 = vmul.f32 %v2395_v53, %v553_v61  ;;  %2054 = vset.pattern.permute.xlu1 %v2145_v4 }
  0xae   : > { %857 = vperm.xlu1 %2054, %v1741_v35  }
  0xb0   : > { %v557_v0 = vpop.permute.xlu1 %556 }
  0xb1   : > { %v2410_v63 = vpop.permute.xlu0 %653  ;;  %v572_v1 = vmul.f32 %v2395_v53, %v557_v0  ;;  %v2478_v0 = vrot.slane %v2251_v13, %v2363_v37 }
  0xb2   : > { %861 = vperm.xlu1 %2054, %v2331_v28  }
  0xb3   : > { %v2417_v5 = vadd.f32 %v572_v1, %v548_v56  ;;  %v2482_v1 = vrot.slane %v2251_v13, %v2386_v50 }
  0xb5   : > { %v2414_v2 = vpop.permute.xlu0 %759  ;;  %v2419_v6 = vpop.permute.xlu1 %595 }
  0xb6   : > { %763 = vperm.xlu1 %2054, %v2303_v24  }
  0xba   : > { %v525_v8 = vpop.permute.xlu0 %524  ;;  %v618_v12 = vpop.permute.xlu1 %617  ;;  %782 = vrot.lane.b32.xlu1 %v2251_v13, %s2150_s22 }
  0xbb   : > { %2056 = vset.pattern.permute.xlu1 %v2146_v11  ;;  %v543_v52 = vmul.f32 %v2389_v51, %v525_v8 }
  0xbe   : > { %v622_v10 = vpop.permute.xlu0 %621  ;;  %817 = vperm.xlu1 %2056, %v2310_v25   ;;  %v377_v16 = vpop.permute.xlu1 %376 }
  0xbf   : > { %v388_v17 = vsel %vm2427_vm7, %v377_v16, 0.0  ;;  %vm2152_vm7 = vmmov 0  }
  0xc0   : > { %v2437_v18 = vrot.slane %v388_v17, %v2363_v37  ;;  %v440_v19 = vrot.slane %v388_v17, %v2383_v47  ;;  %v2441_v20 = vrot.slane %v388_v17, %v2386_v50  ;;  %v637_v17 = vmul.f32 %v2473_v55, %v622_v10 }
  0xc2   : > { %v2431_v15 = vpop.permute.xlu0 %536  ;;  %2057 = vset.pattern.permute.xlu1 %v2144_v3  ;;  %v406_v22 = vpop.permute.xlu1 %405  ;;  %v469_v23 = vmul.f32 %v2441_v20, %v451_v58  ;;  %v442_v24 = vmul.f32 %v440_v19, %v427_v43  ;;  %v470_v26 = vmul.f32 %v2441_v20, %v2370_v41 }
  0xc3   : > { %v419_v27 = vmul.f32 %v2437_v18, %v406_v22  ;;  %837 = vperm.xlu1 %2057, %v2338_v29   ;;  %v636_v22 = vmul.f32 %v2473_v55, %v618_v12 }
  0xc6   : > { %v2443_v21 = vpop.permute.xlu0 %727 }
  0xc7   : > { %2059 = vset.pattern.permute.xlu1 %v2145_v4  ;;  %v431_v30 = vpop.permute.xlu1 %430  ;;  %v441_v4 = vmul.f32 %v440_v19, %v2368_v40 }
  0xc8   : > { %v443_v31 = vmul.f32 %v440_v19, %v431_v30  ;;  %865 = vperm.xlu1 %2059, %v2338_v29  }
  0xca   : > { %v2451_v28 = vpop.permute.xlu0 %735  ;;  %v447_v3 = vadd.f32 %v443_v31, %v419_v27 }
  0xcb   : > { %v435_v34 = vpop.permute.xlu1 %434 }
  0xcc   : > { %v444_v35 = vmul.f32 %v440_v19, %v435_v34  ;;  %869 = vperm.xlu1 %2059, %v2310_v25   ;;  %v890_v25 = vld [vmem:[%s2726_s5 + $0x10] sm:$0xff] }
  0xce   : > { %v2455_v33 = vpop.permute.xlu0 %841 }
  0xd0   : > { %2060 = vset.pattern.permute.xlu1 %v2146_v11  ;;  %v508_v41 = vpop.permute.xlu1 %507 }
  0xd1   : > { %v521_v29 = vmul.f32 %v2380_v46, %v508_v41  ;;  %899 = vperm.xlu1 %2060, %v889_v36  }
  0xd3   : > { %v396_v38 = vpop.permute.xlu0 %395 }
  0xd4   : > { %v417_v39 = vmul.f32 %v2437_v18, %v396_v38 }
  0xd5   : > { %904 = vperm.xlu1 %2060, %v890_v25   ;;  %v533_v49 = vpop.permute.xlu1 %532 }
  0xd6   : > { %v445_v43 = vadd.f32 %v441_v4, %v417_v39  ;;  %v545_v54 = vmul.f32 %v2389_v51, %v533_v49 }
  0xd7   : > { %v401_v44 = vpop.permute.xlu0 %400 }
  0xd8   : > { %v473_v45 = vadd.f32 %v469_v23, %v445_v43  ;;  %v418_v48 = vmul.f32 %v2437_v18, %v401_v44  ;;  %v549_v60 = vadd.f32 %v545_v54, %v521_v29 }
  0xda   : > { %v446_v40 = vadd.f32 %v442_v24, %v418_v48  ;;  %v577_v7 = vadd.f32 %v2400_v57, %v549_v60  ;;  %v646_v9 = vpop.permute.xlu1 %645 }
  0xdb   : > { %v498_v56 = vpop.permute.xlu0 %497  ;;  %v664_v57 = vmul.f32 %v2482_v1, %v646_v9 }
  0xdc   : > { %v474_v58 = vadd.f32 %v470_v26, %v446_v40  ;;  %v519_v61 = vmul.f32 %v2380_v46, %v498_v56  ;;  %v613_v26 = vmul.f32 %v2478_v0, %v2419_v6 }
  0xde   : > { %v547_v8 = vadd.f32 %v543_v52, %v519_v61  ;;  %v580_v16 = vadd.f32 %v2417_v5, %v474_v58  ;;  %v650_v30 = vpop.permute.xlu1 %649  ;;  %v641_v31 = vadd.f32 %v637_v17, %v613_v26 }
  0xdf   : > { %v591_v19 = vpop.permute.xlu0 %590  ;;  %v665_v5 = vmul.f32 %v2482_v1, %v650_v30 }
  0xe0   : > { %v575_v23 = vadd.f32 %v2408_v62, %v547_v8  ;;  %v612_v24 = vmul.f32 %v2478_v0, %v591_v19 }
  0xe1   : > { %v669_v12 = vadd.f32 %v665_v5, %v641_v31 }
  0xe2   : > { %v640_v13 = vadd.f32 %v636_v22, %v612_v24  ;;  %v579_v27 = vadd.f32 %v575_v23, %v473_v45  ;;  %v546_v45 = vmul.f32 %v2389_v51, %v2431_v15 }
  0xe3   : > { %v411_v34 = vpop.permute.xlu0 %410  ;;  %v673_v39 = vadd.f32 %v669_v12, %v580_v16  ;;  %v702_v4 = vpop.permute.xlu1 %701 }
  0xe4   : > { %v668_v10 = vadd.f32 %v664_v57, %v640_v13  ;;  %v420_v36 = vmul.f32 %v2437_v18, %v411_v34 }
  0xe6   : > { %v672_v38 = vadd.f32 %v668_v10, %v579_v27  ;;  %v448_v62 = vadd.f32 %v444_v35, %v420_v36 }
  0xe7   : > { %v513_v43 = vpop.permute.xlu0 %512 }
  0xe8   : > { %v724_v41 = vpop.permute.xlu1 %723  ;;  %v522_v48 = vmul.f32 %v2380_v46, %v513_v43  ;;  %v666_v46 = vmul.f32 %v2482_v1, %v2410_v63 }
  0xea   : > { %v550_v35 = vadd.f32 %v546_v45, %v522_v48 }
  0xeb   : > { %v697_v31 = vpop.permute.xlu0 %696 }
  0xed   : > { %v459_v29 = vpop.permute.xlu1 %458 }
  0xee   : > { %v471_v6 = vmul.f32 %v2441_v20, %v459_v29 }
  0xf0   : > { %v475_v25 = vadd.f32 %v471_v6, %v447_v3  ;;  %v784_v6 = vadd.s32 2, %v2355_v32 }
  0xf1   : > { %v463_v44 = vpop.permute.xlu1 %462 }
  0xf2   : > { %v581_v49 = vadd.f32 %v577_v7, %v475_v25  ;;  %v472_v18 = vmul.f32 %v2441_v20, %v463_v44  ;;  %vm785_vm12 = vcmp.ge.s32.totalorder %v784_v6, 0  ;;  %vm786_vm13 = vcmp.lt.s32.totalorder %v784_v6, 32 }
  0xf3   : > { %vm787_vm14 = vmand %vm785_vm12, %vm786_vm13 }
  0xf4   : > { %v476_v52 = vadd.f32 %v472_v18, %v448_v62 }
  0xf5   : > { %v565_v40 = vpop.permute.xlu1 %564 }
  0xf6   : > { %v574_v54 = vmul.f32 %v2395_v53, %v565_v40  ;;  %v678_v53 = vadd.s32 1, %v2355_v32 }
  0xf8   : > { %v578_v56 = vadd.f32 %v574_v54, %v550_v35  ;;  %vm679_vm8 = vcmp.ge.s32.totalorder %v678_v53, 0  ;;  %vm680_vm9 = vcmp.lt.s32.totalorder %v678_v53, 32  ;;  %v1751_v35 = vld [vmem:[%s2727_s6 + $0x30] sm:$0xff] }
  0xf9   : > { %vm681_vm10 = vmand %vm679_vm8, %vm680_vm9 }
  0xfa   : > { %v2501_v58 = vadd.f32 %v578_v56, %v476_v52  ;;  %v601_v60 = vpop.permute.xlu1 %600  ;;  %v682_v22 = vsel %vm681_vm10, 1, %v2146_v11  ;;  %v788_v52 = vsel %vm787_vm14, 1, %v2146_v11 }
  0xfb   : > { %v614_v3 = vmul.f32 %v2478_v0, %v601_v60  ;;  %v686_v23 = vrot.slane %v682_v22, %v2363_v37 }
  0xfd   : > { %vm2512_vm11 = vcmp.eq.s32.totalorder %v686_v23, 1 }
  0xfe   : > { %vm2603_vm8 = vmpackc.low %vm2512_vm11, %vm2512_vm11 }
  0xff   : > { %v626_v61 = vpop.permute.xlu1 %625 }
 0x100   : > { %v638_v8 = vmul.f32 %v2473_v55, %v626_v61 }
 0x102   : > { %v642_v51 = vadd.f32 %v638_v8, %v614_v3 }
 0x103   : > { %v630_v15 = vpop.permute.xlu1 %629 }
 0x104   : > { %v670_v20 = vadd.f32 %v666_v46, %v642_v51  ;;  %v639_v22 = vmul.f32 %v2473_v55, %v630_v15 }
 0x106   : > { %v2507_v7 = vadd.f32 %v670_v20, %v581_v49 }
 0x108   : > { %v756_v9 = vpop.permute.xlu1 %755 }
 0x10d   : > { %v803_v16 = vpop.permute.xlu1 %802 }
 0x112   : > { %v830_v17 = vpop.permute.xlu1 %829 }
 0x116   : > { %v834_v19 = vpop.permute.xlu1 %833 }
 0x11b   : > { %v658_v24 = vpop.permute.xlu1 %657 }
 0x11f   : > { %v677_v26 = vpop.permute.xlu1 %676 }
 0x120   : > { %v688_v13 = vsel %vm2512_vm11, %v677_v26, 0.0 }
 0x121   : > { %v717_v27 = vrot.slane %v688_v13, %v2363_v37  ;;  %v741_v57 = vrot.slane %v688_v13, %v2383_v47  ;;  %v2521_v30 = vrot.slane %v688_v13, %v2386_v50 }
 0x123   : > { %v718_v34 = vmul.f32 %v717_v27, %v697_v31  ;;  %v742_v5 = vmul.f32 %v741_v57, %v724_v41  ;;  %v712_v10 = vpop.permute.xlu1 %711  ;;  %v719_v36 = vmul.f32 %v717_v27, %v702_v4  ;;  %v770_v62 = vmul.f32 %v2521_v30, %v2403_v59  ;;  %v606_v4 = vpop.permute.xlu0 %605 }
 0x124   : > { %v743_v29 = vmul.f32 %v741_v57, %v2443_v21  ;;  %v771_v44 = vmul.f32 %v2521_v30, %v756_v9  ;;  %v792_v21 = vrot.slane %v788_v52, %v2363_v37  ;;  %v615_v53 = vmul.f32 %v2478_v0, %v606_v4 }
 0x125   : > { %v746_v12 = vadd.f32 %v742_v5, %v718_v34  ;;  %v667_v34 = vmul.f32 %v2482_v1, %v658_v24 }
 0x126   : > { %v747_v25 = vadd.f32 %v743_v29, %v719_v36  ;;  %vm2530_vm15 = vcmp.eq.s32.totalorder %v792_v21, 1 }
 0x127   : > { %v774_v43 = vadd.f32 %v770_v62, %v746_v12  ;;  %v808_v40 = vpop.permute.xlu0 %807  ;;  %vm2636_vm9 = vmpackc.low %vm2530_vm15, %vm2530_vm15 }
 0x128   : > { %v732_v45 = vpop.permute.xlu1 %731  ;;  %v775_v49 = vadd.f32 %v771_v44, %v747_v25 }
 0x129   : > { %v778_v48 = vadd.f32 %v774_v43, %v672_v38 }
 0x12a   : > { %v779_v41 = vadd.f32 %v775_v49, %v673_v39 }
 0x12b   : > { %v707_v38 = vpop.permute.xlu0 %706 }
 0x12c   : > { %v720_v12 = vmul.f32 %v717_v27, %v707_v38 }
 0x12d   : > { %v858_v18 = vpop.permute.xlu1 %857 }
 0x12f   : > { %v813_v20 = vpop.permute.xlu0 %812 }
 0x131   : > { %v862_v59 = vpop.permute.xlu1 %861 }
 0x133   : > { %v895_v5 = vpop.permute.xlu0 %894 }
 0x135   : > { %v764_v32 = vpop.permute.xlu1 %763 }
 0x136   : > { %v773_v36 = vmul.f32 %v2521_v30, %v764_v32 }
 0x139   : > { %v783_v54 = vpop.permute.xlu1 %782 }
 0x13a   : > { %v794_v56 = vsel %vm2530_vm15, %v783_v54, 0.0 }
 0x13b   : > { %v823_v39 = vrot.slane %v794_v56, %v2363_v37  ;;  %v847_v60 = vrot.slane %v794_v56, %v2383_v47  ;;  %v875_v11 = vrot.slane %v794_v56, %v2386_v50  ;;  %v745_v47 = vmul.f32 %v741_v57, %v2451_v28 }
 0x13c   : > { %v721_v50 = vmul.f32 %v717_v27, %v712_v10  ;;  %v772_v28 = vmul.f32 %v2521_v30, %v2414_v2  ;;  %v910_v2 = vpop.permute.xlu0 %909 }
 0x13d   : > { %v824_v61 = vmul.f32 %v823_v39, %v803_v16  ;;  %v848_v3 = vmul.f32 %v847_v60, %v830_v17  ;;  %v818_v8 = vpop.permute.xlu1 %817  ;;  %v876_v51 = vmul.f32 %v875_v11, %v858_v18  ;;  %v825_v13 = vmul.f32 %v823_v39, %v808_v40 }
 0x13e   : > { %v849_v31 = vmul.f32 %v847_v60, %v834_v19  ;;  %v744_v16 = vmul.f32 %v741_v57, %v732_v45  ;;  %v643_v17 = vadd.f32 %v639_v22, %v615_v53  ;;  %v749_v55 = vadd.f32 %v745_v47, %v721_v50 }
 0x13f   : > { %v852_v46 = vadd.f32 %v848_v3, %v824_v61  ;;  %v851_v15 = vmul.f32 %v847_v60, %v2455_v33  ;;  %v827_v43 = vmul.f32 %v823_v39, %v818_v8  ;;  %v877_v1 = vmul.f32 %v875_v11, %v862_v59 }
 0x140   : > { %v853_v29 = vadd.f32 %v849_v31, %v825_v13  ;;  %v671_v6 = vadd.f32 %v667_v34, %v643_v17  ;;  %v748_v19 = vadd.f32 %v744_v16, %v720_v12  ;;  %v777_v24 = vadd.f32 %v773_v36, %v749_v55  ;;  %v1749_v34 = vld [vmem:[%s2727_s6 + $0x20] sm:$0xff] }
 0x141   : > { %v880_v9 = vadd.f32 %v876_v51, %v852_v46  ;;  %v826_v57 = vmul.f32 %v823_v39, %v813_v20  ;;  %v855_v49 = vadd.f32 %v851_v15, %v827_v43  ;;  %v1769_v20 = vld [vmem:[%s2727_s6 + $0x40] sm:$0xff]  ;;  %1861 = vmatprep.mubr.msk.f32.mxu1 %vm973_vm0, %v1749_v34  ;;  %v1511_v15 = vld [vmem:[%s2728_s7 + $0x8] sm:$0xff] }
 0x142   : > { %v838_v23 = vpop.permute.xlu1 %837  ;;  %v881_v45 = vadd.f32 %v877_v1, %v853_v29  ;;  %v776_v4 = vadd.f32 %v772_v28, %v748_v19  ;;  %1889 = vmatprep.mubr.msk.f32.mxu0 %vm973_vm0, %v1769_v20  ;;  %v1770_v29 = vld [vmem:[%s2727_s6 + $0x48] sm:$0xff]  ;;  %v1777_v55 = vld [vmem:[%s2727_s6 + $0x60] sm:$0xff]  ;;  %v1513_v19 = vld [vmem:[%s2728_s7 + $0x18] sm:$0xff] }
 0x143   : > { %v884_v26 = vadd.f32 %v880_v9, %v778_v48  ;;  %v850_v25 = vmul.f32 %v847_v60, %v838_v23  ;;  %v675_v48 = vadd.f32 %v671_v6, %v2501_v58  ;;  %v1772_v6 = vld [vmem:[%s2727_s6 + $0x58] sm:$0xff]  ;;  %v1510_v43 = vld [vmem:[%s2728_s7] sm:$0xff]  ;;  %v1790_v34 = vld [vmem:[%s2727_s6 + $0x88] sm:$0xff] }
 0x144   : > { %v885_v32 = vadd.f32 %v881_v45, %v779_v41  ;;  %v780_v56 = vadd.f32 %v776_v4, %v2507_v7  ;;  %v1563_v1 = vld [vmem:[#allocation4] sm:$0x1] }
 0x145   : > { %v912_v0 = vadd.f32 %v895_v5, %v884_v26  ;;  %v854_v52 = vadd.f32 %v850_v25, %v826_v57  ;;  %v781_v33 = vadd.f32 %v777_v24, %v675_v48  ;;  %v1512_v25 = vld [vmem:[%s2728_s7 + $0x10] sm:$0xff] }
 0x147   : > { %v866_v62 = vpop.permute.xlu1 %865  ;;  %v920_v27 = vmin.f32 %v912_v0, 0.0  ;;  %vm916_vm2 = vcmp.gt.f32.partialorder %v912_v0, 0.0 }
 0x148   : > { %v878_v10 = vmul.f32 %v875_v11, %v866_v62 }
 0x149   : > { %v924_v59 = vmul.f32 1.442695, %v920_v27 }
 0x14a   : > { %v882_v40 = vadd.f32 %v878_v10, %v854_v52 }
 0x14b   : > { %v870_v44 = vpop.permute.xlu1 %869  ;;  %2101 = vpow2.f32 %v924_v59 }
 0x14c   : > { %v879_v18 = vmul.f32 %v875_v11, %v870_v44  ;;  %v886_v61 = vadd.f32 %v882_v40, %v780_v56 }
 0x14e   : > { %v883_v21 = vadd.f32 %v879_v18, %v855_v49 }
 0x150   : > { %v887_v54 = vadd.f32 %v883_v21, %v781_v33  ;;  %v900_v38 = vpop.permute.xlu1 %899 }
 0x151   : > { %v913_v30 = vadd.f32 %v900_v38, %v885_v32 }
 0x152   : > { %v915_v39 = vadd.f32 %v910_v2, %v887_v54 }
 0x153   : > { %v921_v60 = vmin.f32 %v913_v30, 0.0  ;;  %vm917_vm1 = vcmp.gt.f32.partialorder %v913_v30, 0.0 }
 0x154   : > { %v923_v58 = vmin.f32 %v915_v39, 0.0  ;;  %v905_v3 = vpop.permute.xlu1 %904  ;;  %vm919_vm4 = vcmp.gt.f32.partialorder %v915_v39, 0.0 }
 0x155   : > { %v926_v11 = vmul.f32 1.442695, %v921_v60  ;;  %v914_v8 = vadd.f32 %v905_v3, %v886_v61  ;;  %v2102_v7 = vpop.eup %2101  ;;  %v1750_v60 = vld [vmem:[%s2727_s6 + $0x28] sm:$0xff] }
 0x156   : > { %v930_v46 = vmul.f32 1.442695, %v923_v58  ;;  %v1745_v9 = vadd.f32 -1.0, %v2102_v7  ;;  %v1778_v3 = vld [vmem:[%s2727_s6 + $0x68] sm:$0xff]  ;;  %v1779_v7 = vld [vmem:[%s2727_s6 + $0x70] sm:$0xff] }
 0x157   : > { %2103 = vpow2.f32 %v926_v11  ;;  %v922_v51 = vmin.f32 %v914_v8, 0.0  ;;  %vm918_vm5 = vcmp.gt.f32.partialorder %v914_v8, 0.0 }
 0x158   : > { %2105 = vpow2.f32 %v930_v46  ;;  %v936_v13 = vsel %vm916_vm2, %v912_v0, %v1745_v9  ;;  %v1771_v0 = vld [vmem:[%s2727_s6 + $0x50] sm:$0xff]  ;;  %v1752_v9 = vld [vmem:[%s2727_s6 + $0x38] sm:$0xff] }
 0x159   : > { %v928_v41 = vmul.f32 1.442695, %v922_v51 }
 0x15b   : > { %2107 = vpow2.f32 %v928_v41 }
 0x161   : > { %v2104_v53 = vpop.eup %2103 }
 0x162   : > { %v2106_v22 = vpop.eup %2105  ;;  %v1746_v23 = vadd.f32 -1.0, %v2104_v53 }
 0x163   : > { %v1748_v31 = vadd.f32 -1.0, %v2106_v22 }
 0x164   : > { %v937_v26 = vsel %vm917_vm1, %v913_v30, %v1746_v23  ;;  %v1780_v23 = vld [vmem:[%s2727_s6 + $0x78] sm:$0xff] }
 0x165   : > { %v2108_v47 = vpop.eup %2107  ;;  %v2066_v50 = vpack.i.bf16 %v937_v26, %v936_v13  ;;  %v1958_v16 = vpack.c.bf16 %v937_v26, %v936_v13  ;;  %v939_v36 = vsel %vm919_vm4, %v915_v39, %v1748_v31  ;;  %v952_v26 = vld [vmem:[%s2727_s6] sm:$0xff]  ;;  %v953_v31 = vld [vmem:[%s2727_s6 + $0x8] sm:$0xff] }
 0x166   : > { %v1747_v17 = vadd.f32 -1.0, %v2108_v47  ;;  %v1789_v13 = vld [vmem:[%s2727_s6 + $0x80] sm:$0xff]  ;;  %v954_v47 = vld [vmem:[%s2727_s6 + $0x10] sm:$0xff] }
 0x167   : > { %2067 = vrot.lane.b32.xlu0 %v2066_v50, %s2149_s21  ;;  %2062 = vrot.lane.b32.xlu1 %v2066_v50, %s2147_s15 }
 0x168   : > { %v938_v5 = vsel %vm918_vm5, %v914_v8, %v1747_v17  ;;  %1959 = vmatprep.subr.bf16.mxu0 %v1958_v16  ;;  %v1792_v17 = vld [vmem:[%s2727_s6 + $0x98] sm:$0xff] }
 0x169   : > { %1961 = vmatpush3.bf16.msra.mxu0 %v1958_v16  ;;  %v2076_v12 = vpack.i.bf16 %v939_v36, %v938_v5  ;;  %v1962_v62 = vpack.c.bf16 %v939_v36, %v938_v5  ;;  %v955_v16 = vld [vmem:[%s2727_s6 + $0x18] sm:$0xff]  ;;  %v2151_v5 = vmov 0.0|0.0   ;;  %v2153_v36 = vmov 0.0  }
 0x16b   : > { %2077 = vrot.lane.b32.xlu0 %v2076_v12, %s2149_s21  ;;  %2072 = vrot.lane.b32.xlu1 %v2076_v12, %s2147_s15 }
 0x16c   : > { %1963 = vmatprep.subr.bf16.mxu0 %v1962_v62 }
 0x16d   : > { %1965 = vmatpush3.bf16.msra.mxu0 %v1962_v62 }
 0x16f   : > { %2087 = vrot.lane.b32.xlu0 %v2066_v50, %s2150_s22  ;;  %2082 = vrot.lane.b32.xlu1 %v2066_v50, %s2148_s12  ;;  %v1791_v50 = vld [vmem:[%s2727_s6 + $0x90] sm:$0xff] }
 0x170   : > { %1890 = vmatmul.mubr.msk.f32.vlgmr.msra.gmra.mrb[0].mxu0 %vm973_vm0, %v1770_v29 }
 0x171   : > { %1892 = vmatprep.mubr.msk.f32.mxu0 %vm973_vm0, %v1771_v0 }
 0x173   : > { %2097 = vrot.lane.b32.xlu0 %v2076_v12, %s2150_s22  ;;  %2092 = vrot.lane.b32.xlu1 %v2076_v12, %s2148_s12 }
 0x174   : > { %1893 = vmatmul.mubr.msk.f32.gmra.mrb[2].mxu0 %vm973_vm0, %v1772_v6 }
 0x175   : > { %1903 = vmatprep.mubr.msk.f32.mxu0 %vm973_vm0, %v1777_v55 }
 0x177   : > { %1521 = vperm.xlu0 %2058, %v1511_v15   ;;  %1516 = vperm.xlu1 %2060, %v1510_v43  }
 0x17b   : > { %1531 = vperm.xlu0 %2058, %v1513_v19   ;;  %1526 = vperm.xlu1 %2060, %v1512_v25  }
 0x17f   : > { %1566 = vperm.xlu1 %2060, %v1563_v1  }
 0x1d9   : > { %v2068_v28 = vpop.permute.xlu0 %2067  ;;  %v2063_v24 = vpop.permute.xlu1 %2062 }
 0x1da   : > { %v2070_v10 = vunpack.i.h.bf16 %v2068_v28  ;;  %v2069_v44 = vunpack.i.l.bf16 %v2068_v28  ;;  %v2065_v45 = vunpack.i.h.bf16 %v2063_v24  ;;  %v2064_v27 = vunpack.i.l.bf16 %v2063_v24 }
 0x1dc   : > { %v1966_v49 = vpack.c.bf16 %v2070_v10, %v2069_v44  ;;  %v1934_v18 = vpack.c.bf16 %v2065_v45, %v2064_v27 }
 0x1dd   : > { %v2078_v4 = vpop.permute.xlu0 %2077  ;;  %v2073_v42 = vpop.permute.xlu1 %2072 }
 0x1de   : > { %v2080_v52 = vunpack.i.h.bf16 %v2078_v4  ;;  %v2079_v33 = vunpack.i.l.bf16 %v2078_v4  ;;  %v2075_v21 = vunpack.i.h.bf16 %v2073_v42  ;;  %v2074_v40 = vunpack.i.l.bf16 %v2073_v42  ;;  %1936 = vmatprep.subr.msk.bf16.mxu1 %vm2596_vm6, %v1934_v18  ;;  %1968 = vmatprep.subr.msk.bf16.mxu0 %vm2603_vm8, %v1966_v49 }
 0x1df   : > { %1939 = vmatpush3.bf16.msk.msra.mxu1 %vm2596_vm6, %v1934_v18  ;;  %1971 = vmatpush3.bf16.msk.msra.mxu0 %vm2603_vm8, %v1966_v49 }
 0x1e0   : > { %v1972_v63 = vpack.c.bf16 %v2080_v52, %v2079_v33  ;;  %v1940_v32 = vpack.c.bf16 %v2075_v21, %v2074_v40 }
 0x1e1   : > { %v2088_v59 = vpop.permute.xlu0 %2087  ;;  %v2083_v54 = vpop.permute.xlu1 %2082 }
 0x1e2   : > { %v2090_v38 = vunpack.i.h.bf16 %v2088_v59  ;;  %v2089_v2 = vunpack.i.l.bf16 %v2088_v59  ;;  %v2085_v30 = vunpack.i.h.bf16 %v2083_v54  ;;  %v2084_v56 = vunpack.i.l.bf16 %v2083_v54  ;;  %1942 = vmatprep.subr.msk.bf16.mxu1 %vm2596_vm6, %v1940_v32  ;;  %1974 = vmatprep.subr.msk.bf16.mxu0 %vm2603_vm8, %v1972_v63 }
 0x1e3   : > { %1945 = vmatpush3.bf16.msk.msra.mxu1 %vm2596_vm6, %v1940_v32  ;;  %1977 = vmatpush3.bf16.msk.msra.mxu0 %vm2603_vm8, %v1972_v63 }
 0x1e4   : > { %v1978_v61 = vpack.c.bf16 %v2090_v38, %v2089_v2  ;;  %v1946_v58 = vpack.c.bf16 %v2085_v30, %v2084_v56 }
 0x1e5   : > { %v2098_v11 = vpop.permute.xlu0 %2097  ;;  %v2093_v8 = vpop.permute.xlu1 %2092 }
 0x1e6   : > { %v2100_v46 = vunpack.i.h.bf16 %v2098_v11  ;;  %v2099_v51 = vunpack.i.l.bf16 %v2098_v11  ;;  %v2095_v41 = vunpack.i.h.bf16 %v2093_v8  ;;  %v2094_v20 = vunpack.i.l.bf16 %v2093_v8  ;;  %1862 = vmatmul.mubr.msk.f32.vlgmr.msra.gmra.mrb[0].mxu1 %vm973_vm0, %v1750_v60  ;;  %1948 = vmatprep.subr.msk.bf16.mxu1 %vm2622_vm3, %v1946_v58  ;;  %v1562_v8 = vld [vmem:[%s2729_s8] sm:$0x1] }
 0x1e7   : > { %1904 = vmatmul.mubr.msk.f32.vlgmr.msra.gmra.mrb[0].mxu0 %vm973_vm0, %v1778_v3  ;;  %1980 = vmatprep.subr.msk.bf16.mxu0 %vm2636_vm9, %v1978_v61 }
 0x1e8   : > { %v1984_v53 = vpack.c.bf16 %v2100_v46, %v2099_v51  ;;  %v1952_v22 = vpack.c.bf16 %v2095_v41, %v2094_v20  ;;  %1951 = vmatpush3.bf16.msk.msra.mxu1 %vm2622_vm3, %v1946_v58  ;;  %1983 = vmatpush3.bf16.msk.msra.mxu0 %vm2636_vm9, %v1978_v61 }
 0x1e9   : > { %1864 = vmatprep.mubr.msk.f32.mxu1 %vm973_vm0, %v1751_v35  ;;  %1906 = vmatprep.mubr.msk.f32.mxu0 %vm973_vm0, %v1779_v7 }
 0x1ea   : > { %1865 = vmatmul.mubr.msk.f32.gmra.mrb[2].mxu1 %vm973_vm0, %v1752_v9  ;;  %1954 = vmatprep.subr.msk.bf16.mxu1 %vm2622_vm3, %v1952_v22 }
 0x1eb   : > { %1907 = vmatmul.mubr.msk.f32.gmra.mrb[2].mxu0 %vm973_vm0, %v1780_v23  ;;  %1986 = vmatprep.subr.msk.bf16.mxu0 %vm2636_vm9, %v1984_v53 }
 0x1ec   : > { %1957 = vmatpush3.bf16.msk.msra.mxu1 %vm2622_vm3, %v1952_v22  ;;  %1989 = vmatpush3.bf16.msk.msra.mxu0 %vm2636_vm9, %v1984_v53 }
 0x1ed   : > { %1875 = vmatprep.mubr.msk.f32.mxu1 %vm973_vm0, %v952_v26  ;;  %1917 = vmatprep.mubr.msk.f32.mxu0 %vm973_vm0, %v1789_v13 }
 0x1ee   : > { %1990 = vmatprep.subr.bf16.mxu1 %v2151_v5 }
 0x1ef   : > { %1876 = vmatmul.mubr.msk.f32.vlgmr.msra.gmra.mrb[0].mxu1 %vm973_vm0, %v953_v31  ;;  %1918 = vmatmul.mubr.msk.f32.vlgmr.msra.gmra.mrb[0].mxu0 %vm973_vm0, %v1790_v34 }
 0x1f0   : > { %1878 = vmatprep.mubr.msk.f32.mxu1 %vm973_vm0, %v954_v47  ;;  %1920 = vmatprep.mubr.msk.f32.mxu0 %vm973_vm0, %v1791_v50 }
 0x1f3   : > { %1879 = vmatmul.mubr.msk.f32.gmra.mrb[2].mxu1 %vm973_vm0, %v955_v16  ;;  %1921 = vmatmul.mubr.msk.f32.gmra.mrb[2].mxu0 %vm973_vm0, %v1792_v17 }
 0x1f4   : > { %1931 = vmatprep.mubr.msk.f32.mxu1 %vm2152_vm7, %v2153_v36 }
 0x1f6   : > { %v1522_v12 = vpop.permute.xlu0 %1521  ;;  %v1517_v62 = vpop.permute.xlu1 %1516 }
 0x1fa   : > { %v1532_v45 = vpop.permute.xlu0 %1531  ;;  %v1527_v49 = vpop.permute.xlu1 %1526 }
 0x1fe   : > { %v1567_v46 = vpop.permute.xlu1 %1566 }
 0x1ff   : > { %v1572_v51 = vrot.slane %v1567_v46, %v2363_v37 }
 0x2c2   : > { %v1877_v29 = vpop.f32.mrb[0].mxu1  ;;  %v1919_v0 = vpop.f32.mrb[0].mxu0 }
 0x2c3   : > { %v1996_v6 = vadd.f32 %v1919_v0, %v1877_v29  ;;  %v1149_v55 = vpop.f32.mrb[1].mxu1  ;;  %v1487_v15 = vpop.f32.mrb[1].mxu0 }
 0x2c4   : > { %v1997_v43 = vadd.f32 %v1487_v15, %v1149_v55 }
 0x2c5   : > { %v1535_v19 = vadd.f32 %v1996_v6, %v1522_v12 }
 0x2c6   : > { %v1534_v25 = vadd.f32 %v1997_v43, %v1517_v62  ;;  %v1880_v1 = vpop.f32.mrb[2].mxu1  ;;  %v1922_v28 = vpop.f32.mrb[2].mxu0 }
 0x2c7   : > { %v1543_v24 = vmin.f32 %v1535_v19, 0.0  ;;  %v1998_v57 = vadd.f32 %v1922_v28, %v1880_v1  ;;  %v1159_v10 = vpop.f32.mrb[3].mxu1  ;;  %v1497_v44 = vpop.f32.mrb[3].mxu0  ;;  %vm1539_vm10 = vcmp.gt.f32.partialorder %v1535_v19, 0.0 }
 0x2c8   : > { %v1542_v27 = vmin.f32 %v1534_v25, 0.0  ;;  %v1999_v48 = vadd.f32 %v1497_v44, %v1159_v10  ;;  %vm1538_vm11 = vcmp.gt.f32.partialorder %v1534_v25, 0.0 }
 0x2c9   : > { %v1548_v18 = vmul.f32 1.442695, %v1543_v24  ;;  %v1537_v4 = vadd.f32 %v1998_v57, %v1532_v45 }
 0x2ca   : > { %v1546_v42 = vmul.f32 1.442695, %v1542_v27  ;;  %v1536_v52 = vadd.f32 %v1999_v48, %v1527_v49 }
 0x2cb   : > { %2109 = vpow2.f32 %v1548_v18  ;;  %v1545_v33 = vmin.f32 %v1537_v4, 0.0  ;;  %vm1541_vm12 = vcmp.gt.f32.partialorder %v1537_v4, 0.0 }
 0x2cc   : > { %2111 = vpow2.f32 %v1546_v42  ;;  %v1544_v21 = vmin.f32 %v1536_v52, 0.0  ;;  %vm1540_vm13 = vcmp.gt.f32.partialorder %v1536_v52, 0.0 }
 0x2cd   : > { %v1552_v40 = vmul.f32 1.442695, %v1545_v33 }
 0x2ce   : > { %v1550_v63 = vmul.f32 1.442695, %v1544_v21 }
 0x2cf   : > { %2113 = vpow2.f32 %v1552_v40 }
 0x2d0   : > { %2115 = vpow2.f32 %v1550_v63 }
 0x2d5   : > { %v2110_v32 = vpop.eup %2109 }
 0x2d6   : > { %v2112_v59 = vpop.eup %2111  ;;  %v1802_v54 = vadd.f32 -1.0, %v2110_v32 }
 0x2d7   : > { %v1801_v38 = vadd.f32 -1.0, %v2112_v59 }
 0x2d8   : > { %v1559_v2 = vsel %vm1539_vm10, %v1535_v19, %v1802_v54 }
 0x2d9   : > { %v2114_v30 = vpop.eup %2113  ;;  %v1558_v56 = vsel %vm1538_vm11, %v1534_v25, %v1801_v38 }
 0x2da   : > { %v2116_v39 = vpop.eup %2115  ;;  %v1804_v60 = vadd.f32 -1.0, %v2114_v30  ;;  %v1991_v14 = vpack.c.bf16 %v1559_v2, %v1558_v56 }
 0x2db   : > { %v1803_v61 = vadd.f32 -1.0, %v2116_v39 }
 0x2dc   : > { %v1561_v58 = vsel %vm1541_vm12, %v1537_v4, %v1804_v60  ;;  %1992 = vmatpush3.bf16.msra.mxu1 %v1991_v14 }
 0x2dd   : > { %v1560_v3 = vsel %vm1540_vm13, %v1536_v52, %v1803_v61  ;;  %1993 = vmatprep.subr.bf16.mxu1 %v2151_v5 }
 0x2de   : > { %v1994_v11 = vpack.c.bf16 %v1561_v58, %v1560_v3 }
 0x2e0   : > { %1995 = vmatpush3.bf16.msra.mxu1 %v1994_v11 }
 0x2e3   : > { %1932 = vmatmul.mubr.msk.f32.vlgmr.msra.gmra.mrb[4].mxu1 %vm973_vm0, %v1562_v8 }
 0x3b6   : > { %v1642_v41 = vpop.f32.mrb[4].mxu1 }
 0x3b7   : > { %v1643_v20 = vadd.f32 %v1642_v41, %v1572_v51  ;;  %v1933_v35 = vpop.f32.mrb[5].mxu1 }
 0x3b9   : > { %v1646_v7 = vsub.f32 0.0, %v1643_v20 }
 0x3bb   : > { %v1647_v9 = vmul.f32 1.442695, %v1646_v7 }
 0x3bd   : > { %2117 = vpow2.f32 %v1647_v9 }
 0x3c7   : > { %v2118_v53 = vpop.eup %2117 }
 0x3c8   : > { %v1649_v22 = vadd.f32 1.0, %v2118_v53 }
 0x3ca   : > { %2119 = vrcp.f32 %v1649_v22 }
 0x3d4   : > { %v2120_v23 = vpop.eup %2119 }
 0x3d5   : > { %1652 = vst [vmem:[%s365_s9] sm:$0x1] %v2120_v23 }
 0x3d6 PF: > { %s28_s20 = sadd.s32 1, %s2141_s20  }
 0x3d7   : > { %p25_p9 = scmp.ge.s32.totalorder %s28_s20, 4  }
 0x3d9   :  { %27 = sbr.rel (!%p25_p9) target bundleno = 16 (0x10), region = 100 }

</bundles_post_ra>
